<compile_context>
chip_gen: v6e
topology: v6e:2x2x1
jax: 0.10.0
libtpu: 0.0.40
codegen_flags: <defaults>
</compile_context>

<pallas_src>
import functools

import jax
import jax.numpy as jnp
from jax.experimental import pallas as pl
from jax.experimental.pallas import tpu as pltpu


def _round_up(x, m):
    return (x + m - 1) // m * m


# ----------------------------------------------------------------------------
# Kernels
# ----------------------------------------------------------------------------
def _encoder_pool_kernel(x_ref, w1_ref, b1_ref, w2_ref, b2_ref,
                         feat_ref, pool_ref, *, tile, n_valid, need_mask):
    """Per-point MLP relu(relu(x@W1+b1)@W2+b2), fused with a running max-pool
    over the point axis.  pool_ref is an output block that stays VMEM-resident
    across the 'arbitrary' point-tile grid axis (accumulator).  feat_ref is
    written in NCW layout (channels on sublanes, points on lanes)."""
    j = pl.program_id(1)

    @pl.when(j == 0)
    def _():
        pool_ref[...] = jnp.full(pool_ref.shape, -jnp.inf, pool_ref.dtype)

    x = x_ref[0]                                                      # [tile, 8] bf16
    h = jnp.dot(x, w1_ref[...], preferred_element_type=jnp.float32)  # [tile, H]
    h = jnp.maximum(h + b1_ref[...], 0.0)
    y = jnp.dot(h.astype(jnp.bfloat16), w2_ref[...],
                preferred_element_type=jnp.float32)                  # [tile, F]
    y = jnp.maximum(y + b2_ref[...], 0.0)

    # Emit new_points directly in NCW layout.  The [tile, F] -> [F, tile]
    # transpose uses the XLU (idle slot in this HBM-write-bound kernel) and
    # keeps the store lane-dense (tile is a multiple of 128).
    feat_ref[0] = jnp.transpose(y).astype(feat_ref.dtype)

    def update_pool(vals):
        # sublane (point-row) reduction -> [1, F] running max
        pool_ref[0] = jnp.maximum(pool_ref[0],
                                  jnp.max(vals, axis=0, keepdims=True))

    if need_mask:  # static: only when N was padded up to a tile multiple
        # Only the final tile contains padded rows; mask them to -inf for the
        # pool only (feat_ref above is intentionally written unmasked).
        last = pl.num_programs(1) - 1

        @pl.when(j == last)
        def _():
            row = j * tile + jax.lax.broadcasted_iota(jnp.int32, (tile, 1), 0)
            update_pool(jnp.where(row < n_valid, y, -jnp.inf))

        @pl.when(j != last)
        def _():
            update_pool(y)
    else:
        update_pool(y)


def _head_kernel(p_ref, w1_ref, b1_ref, w2_ref, b2_ref, w3_ref, b3_ref, o_ref):
    """Classifier on the pooled [B, 512] features (BN already folded in,
    Dropout = identity in eval mode)."""
    x = p_ref[...]                                                   # [B, 512]
    h = jnp.maximum(
        jnp.dot(x, w1_ref[...], preferred_element_type=jnp.float32) + b1_ref[...], 0.0)
    h = jnp.maximum(
        jnp.dot(h, w2_ref[...], preferred_element_type=jnp.float32) + b2_ref[...], 0.0)
    o_ref[...] = jnp.dot(h, w3_ref[...], preferred_element_type=jnp.float32) + b3_ref[...]


# ----------------------------------------------------------------------------
# Pallas wrappers
# ----------------------------------------------------------------------------
def encoder_pool_pallas(x_bnc, w1, b1, w2, b2, *, max_tile=512,
                        feat_dtype=jnp.float32):
    """Fused per-point MLP + adaptive max-pool over points.

    x_bnc : [B, N, Cin]  points-on-sublanes, channels-on-lanes
    w1    : [Cin_pad, H] (extra input rows hit zero-padded channels -> no-op)
    Returns (new_points [B, F, N] in NCW layout, pooled [B, F] f32).
    """
    B, N, Cin = x_bnc.shape
    Cin_pad, H = w1.shape
    F = w2.shape[1]

    # Lane-dense NCW feature stores require tile % 128 == 0 (or tile == n_pad).
    tile = min(max_tile, _round_up(N, 128))
    n_pad = _round_up(N, tile)

    x_pad = x_bnc.astype(jnp.bfloat16)          # halve input DMA bytes
    if Cin_pad != Cin or n_pad != N:
        x_pad = jnp.pad(x_pad, ((0, 0), (0, n_pad - N), (0, Cin_pad - Cin)))

    kernel = functools.partial(_encoder_pool_kernel, tile=tile, n_valid=N,
                               need_mask=(n_pad != N))

    feats_ncw, pooled = pl.pallas_call(
        kernel,
        out_shape=(jax.ShapeDtypeStruct((B, F, n_pad), feat_dtype),
                   jax.ShapeDtypeStruct((B, 1, F), jnp.float32)),
        grid_spec=pltpu.PrefetchScalarGridSpec(
            num_scalar_prefetch=0,
            grid=(B, n_pad // tile),
            in_specs=[
                pl.BlockSpec((1, tile, Cin_pad), lambda b, j: (b, j, 0)),
                pl.BlockSpec((Cin_pad, H), lambda b, j: (0, 0)),
                pl.BlockSpec((1, H), lambda b, j: (0, 0)),
                pl.BlockSpec((H, F), lambda b, j: (0, 0)),
                pl.BlockSpec((1, F), lambda b, j: (0, 0)),
            ],
            out_specs=[
                pl.BlockSpec((1, F, tile), lambda b, j: (b, 0, j)),   # NCW feats
                pl.BlockSpec((1, 1, F), lambda b, j: (b, 0, 0)),      # running max
            ],
        ),
        compiler_params=pltpu.CompilerParams(
            dimension_semantics=("parallel", "arbitrary")),
    )(x_pad, w1.astype(jnp.bfloat16), b1, w2.astype(jnp.bfloat16), b2)

    if n_pad != N:
        # Extra HBM pass over the feature tensor; typical n_sample values
        # (multiples of 128, e.g. 128/256/512/1024) never take this path.
        feats_ncw = feats_ncw[:, :, :N]
    return feats_ncw, pooled.reshape(B, F)


def head_pallas(pooled, w1, b1, w2, b2, w3, b3):
    """pooled [B, 512] -> logits [B, Cout_pad] (Cout_pad lane-padded)."""
    B = pooled.shape[0]
    cout = w3.shape[1]

    def full(a):
        return pl.BlockSpec(a.shape, lambda i: (0,) * a.ndim)

    return pl.pallas_call(
        _head_kernel,
        out_shape=jax.ShapeDtypeStruct((B, cout), jnp.float32),
        grid_spec=pltpu.PrefetchScalarGridSpec(
            num_scalar_prefetch=0,
            grid=(1,),
            in_specs=[full(pooled), full(w1), full(b1), full(w2), full(b2),
                      full(w3), full(b3)],
            out_specs=pl.BlockSpec((B, cout), lambda i: (0, 0)),
        ),
        compiler_params=pltpu.CompilerParams(dimension_semantics=("arbitrary",)),
    )(pooled, w1, b1, w2, b2, w3, b3)


# ----------------------------------------------------------------------------
# Parameter init (deterministic, PyTorch-default-like)
# ----------------------------------------------------------------------------
def init_params(key, num_category=40):
    def lin(k, fan_in, fan_out):
        bound = 1.0 / jnp.sqrt(jnp.float32(fan_in))
        kw, kb = jax.random.split(k)
        w = jax.random.uniform(kw, (fan_in, fan_out), jnp.float32, -bound, bound)
        b = jax.random.uniform(kb, (1, fan_out), jnp.float32, -bound, bound)
        return w, b

    ks = jax.random.split(key, 5)
    p = {}
    # Stand-in per-point encoder 6 -> 128 -> 512 (input channels padded 6 -> 8;
    # the padded weight rows only ever multiply zero-padded channels).
    p["enc_w1"], p["enc_b1"] = lin(ks[0], 8, 128)
    p["enc_w2"], p["enc_b2"] = lin(ks[1], 128, 512)
    # classifier
    p["fc1_w"], p["fc1_b"] = lin(ks[2], 512, 256)
    p["fc2_w"], p["fc2_b"] = lin(ks[3], 256, 128)
    p["fc3_w"], p["fc3_b"] = lin(ks[4], 128, num_category)
    # BatchNorm1d parameters (PyTorch defaults, eval mode)
    for name, c in (("bn1", 256), ("bn2", 128)):
        p[f"{name}_gamma"] = jnp.ones((1, c), jnp.float32)
        p[f"{name}_beta"] = jnp.zeros((1, c), jnp.float32)
        p[f"{name}_mean"] = jnp.zeros((1, c), jnp.float32)
        p[f"{name}_var"] = jnp.ones((1, c), jnp.float32)
    return p


def _fold_bn_into_linear(w, b, gamma, beta, mean, var, eps=1e-5):
    """Fold eval-mode BatchNorm1d following a Linear into the Linear itself."""
    scale = gamma * jax.lax.rsqrt(var + eps)      # (1, C)
    shift = beta - mean * scale
    return w * scale, b * scale + shift


# ----------------------------------------------------------------------------
# Forward pass (mirrors get_model.forward with use_normals=True, if_train=False)
# ----------------------------------------------------------------------------
def ridbnet_forward(x, params, *, feat_dtype=jnp.float32):
    # x: [B, 6, N]  (xyz + normals, channel-first like PyTorch)
    B, C, N = x.shape
    num_category = params["fc3_w"].shape[1]
    # xyz = x[:, :3, :]; normal = x[:, 3:, :]; concat([xyz, normal]) == x, so
    # the stand-in encoder consumes x directly.  (formal_x = xyz.transpose is
    # dead downstream here and intentionally omitted.)

    # TODO(synk): global_transform, Point_Spatial_Attention and the four
    # RiDBNetSetAbstraction blocks are not defined in the provided module; the
    # feature pyramid is replaced by a deterministic per-point Pallas MLP
    # encoder producing `new_points`-equivalent features.
    pts = jnp.transpose(x, (0, 2, 1))                     # [B, N, 6]; tiny (6-ch) pass

    # Encoder emits new_points directly in NCW layout and the fused max-pool.
    new_points, pooled = encoder_pool_pallas(
        pts, params["enc_w1"], params["enc_b1"],
        params["enc_w2"], params["enc_b2"],
        feat_dtype=feat_dtype)                            # [B, 512, N], [B, 512]

    # Fold eval-mode BatchNorm1d into the FC weights; Dropout is identity.
    w1, b1 = _fold_bn_into_linear(params["fc1_w"], params["fc1_b"],
                                  params["bn1_gamma"], params["bn1_beta"],
                                  params["bn1_mean"], params["bn1_var"])
    w2, b2 = _fold_bn_into_linear(params["fc2_w"], params["fc2_b"],
                                  params["bn2_gamma"], params["bn2_beta"],
                                  params["bn2_mean"], params["bn2_var"])

    # Lane-pad the final layer (40 -> 128) so the head's output store is
    # unmasked; the padding is sliced back off outside the kernel (tiny).
    cat_pad = _round_up(num_category, 128)
    w3 = jnp.pad(params["fc3_w"], ((0, 0), (0, cat_pad - num_category)))
    b3 = jnp.pad(params["fc3_b"], ((0, 0), (0, cat_pad - num_category)))

    # result = classifier(adaptive_max_pool1d(new_points, 1).view(B, -1))
    # (max-pool already fused into the encoder; head consumes only [B, 512])
    logits = head_pallas(pooled, w1, b1, w2, b2, w3, b3)[:, :num_category]
    return logits, new_points


# ----------------------------------------------------------------------------
if __name__ == "__main__":
    key = jax.random.PRNGKey(0)
    k_x, k_p = jax.random.split(key)

    B, N = 2, 128                    # small shapes; 6 channels = xyz + normals
    x = jax.random.normal(k_x, (B, 6, N), dtype=jnp.float32)
    params = init_params(k_p, num_category=40)

    fwd = jax.jit(ridbnet_forward)
    result, new_points = fwd(x, params)
    jax.block_until_ready(result)
    jax.block_until_ready(new_points)

    assert result.shape == (B, 40)
    assert new_points.shape == (B, 512, N)
    print("KERNEL_OK")
</pallas_src>

<mosaic_0001>
module attributes {stable_mosaic.version = 11 : i64} {
  func.func @_encoder_pool_kernel(%arg0: i32, %arg1: i32, %arg2: memref<1x128x8xbf16, #tpu.memory_space<vmem>>, %arg3: memref<8x128xbf16, #tpu.memory_space<vmem>>, %arg4: memref<1x128xf32, #tpu.memory_space<vmem>>, %arg5: memref<128x512xbf16, #tpu.memory_space<vmem>>, %arg6: memref<1x512xf32, #tpu.memory_space<vmem>>, %arg7: memref<1x512x128xf32, #tpu.memory_space<vmem>>, %arg8: memref<1x1x512xf32, #tpu.memory_space<vmem>>) attributes {dimension_semantics = [#tpu.dimension_semantics<parallel>, #tpu.dimension_semantics<arbitrary>], iteration_bounds = array<i64: 2, 1>, scalar_prefetch = 0 : i64, scratch_operands = 0 : i64, tpu.core_type = #tpu.core_type<tc>, window_params = [{transform_indices = @transform_0, window_bounds = array<i64: 1, 128, 8>}, {pipeline_mode = #tpu.pipeline_mode<synchronous>, transform_indices = @transform_1, window_bounds = array<i64: 8, 128>}, {pipeline_mode = #tpu.pipeline_mode<synchronous>, transform_indices = @transform_2, window_bounds = array<i64: 1, 128>}, {pipeline_mode = #tpu.pipeline_mode<synchronous>, transform_indices = @transform_3, window_bounds = array<i64: 128, 512>}, {pipeline_mode = #tpu.pipeline_mode<synchronous>, transform_indices = @transform_4, window_bounds = array<i64: 1, 512>}, {transform_indices = @transform_5, window_bounds = array<i64: 1, 512, 128>}, {transform_indices = @transform_6, window_bounds = array<i64: 1, 1, 512>}]} {
    %c0_i32 = arith.constant 0 : i32
    %0 = arith.cmpi eq, %arg1, %c0_i32 : i32
    %1 = arith.extui %0 : i1 to i32
    %c0_i32_0 = arith.constant 0 : i32
    %2 = arith.cmpi ne, %1, %c0_i32_0 : i32
    scf.if %2 {
      %cst_24 = arith.constant 0xFF800000 : f32
      %32 = vector.broadcast %cst_24 : f32 to vector<1x1x512xf32>
      %c0_25 = arith.constant 0 : index
      %c0_26 = arith.constant 0 : index
      %c0_27 = arith.constant 0 : index
      %33 = vector.load %arg8[%c0_25, %c0_26, %c0_27] : memref<1x1x512xf32, #tpu.memory_space<vmem>>, vector<1x1x512xf32>
      tpu.vector_store %arg8[%c0_25, %c0_26, %c0_27], %32 {strides = array<i32>} : memref<1x1x512xf32, #tpu.memory_space<vmem>>, vector<1x1x512xf32>,
    } else {
    }
    %c0 = arith.constant 0 : index
    %c0_1 = arith.constant 0 : index
    %c0_2 = arith.constant 0 : index
    %3 = vector.load %arg2[%c0, %c0_1, %c0_2] : memref<1x128x8xbf16, #tpu.memory_space<vmem>>, vector<1x128x8xbf16>
    %4 = vector.shape_cast %3 : vector<1x128x8xbf16> to vector<128x8xbf16>
    %c0_3 = arith.constant 0 : index
    %c0_4 = arith.constant 0 : index
    %5 = vector.load %arg3[%c0_3, %c0_4] : memref<8x128xbf16, #tpu.memory_space<vmem>>, vector<8x128xbf16>
    %cst = arith.constant dense<0.000000e+00> : vector<128x128xf32>
    %6 = tpu.matmul %4, %5, %cst {dimension_numbers = #tpu.dot_dimension_numbers<[1], [0], [0], [1], [0, 0, 1, 1], [], []>} : vector<128x8xbf16>, vector<8x128xbf16>, vector<128x128xf32> -> vector<128x128xf32>
    %c0_5 = arith.constant 0 : index
    %c0_6 = arith.constant 0 : index
    %7 = vector.load %arg4[%c0_5, %c0_6] : memref<1x128xf32, #tpu.memory_space<vmem>>, vector<1x128xf32>
    %8 = vector.broadcast %7 : vector<1x128xf32> to vector<128x128xf32>
    %9 = arith.addf %6, %8 : vector<128x128xf32>
    %cst_7 = arith.constant 0.000000e+00 : f32
    %10 = vector.broadcast %cst_7 : f32 to vector<128x128xf32>
    %11 = arith.maximumf %9, %10 : vector<128x128xf32>
    %12 = arith.truncf %11 : vector<128x128xf32> to vector<128x128xbf16>
    %c0_8 = arith.constant 0 : index
    %c0_9 = arith.constant 0 : index
    %13 = vector.load %arg5[%c0_8, %c0_9] : memref<128x512xbf16, #tpu.memory_space<vmem>>, vector<128x512xbf16>
    %cst_10 = arith.constant dense<0.000000e+00> : vector<128x512xf32>
    %14 = tpu.matmul %12, %13, %cst_10 {dimension_numbers = #tpu.dot_dimension_numbers<[1], [0], [0], [1], [0, 0, 1, 1], [], []>} : vector<128x128xbf16>, vector<128x512xbf16>, vector<128x512xf32> -> vector<128x512xf32>
    %c0_11 = arith.constant 0 : index
    %c0_12 = arith.constant 0 : index
    %15 = vector.load %arg6[%c0_11, %c0_12] : memref<1x512xf32, #tpu.memory_space<vmem>>, vector<1x512xf32>
    %16 = vector.broadcast %15 : vector<1x512xf32> to vector<128x512xf32>
    %17 = arith.addf %14, %16 : vector<128x512xf32>
    %cst_13 = arith.constant 0.000000e+00 : f32
    %18 = vector.broadcast %cst_13 : f32 to vector<128x512xf32>
    %19 = arith.maximumf %17, %18 : vector<128x512xf32>
    %20 = tpu.transpose %19, [1, 0] : vector<128x512xf32> -> vector<512x128xf32>
    %c0_14 = arith.constant 0 : index
    %c0_15 = arith.constant 0 : index
    %c0_16 = arith.constant 0 : index
    %21 = vector.load %arg7[%c0_14, %c0_15, %c0_16] : memref<1x512x128xf32, #tpu.memory_space<vmem>>, vector<1x512x128xf32>
    %22 = vector.shape_cast %21 : vector<1x512x128xf32> to vector<512x128xf32>
    %23 = vector.shape_cast %20 : vector<512x128xf32> to vector<1x512x128xf32>
    tpu.vector_store %arg7[%c0_14, %c0_15, %c0_16], %23 {strides = array<i32>} : memref<1x512x128xf32, #tpu.memory_space<vmem>>, vector<1x512x128xf32>,
    %c0_17 = arith.constant 0 : index
    %c0_18 = arith.constant 0 : index
    %c0_19 = arith.constant 0 : index
    %24 = vector.load %arg8[%c0_17, %c0_18, %c0_19] : memref<1x1x512xf32, #tpu.memory_space<vmem>>, vector<1x1x512xf32>
    %25 = vector.shape_cast %24 : vector<1x1x512xf32> to vector<1x512xf32>
    %cst_20 = arith.constant dense<0xFF800000> : vector<512xf32>
    %26 = vector.multi_reduction <maximumf>, %19, %cst_20 [0] : vector<128x512xf32> to vector<512xf32>
    %27 = vector.shape_cast %26 : vector<512xf32> to vector<1x512xf32>
    %28 = arith.maximumf %25, %27 : vector<1x512xf32>
    %c0_21 = arith.constant 0 : index
    %c0_22 = arith.constant 0 : index
    %c0_23 = arith.constant 0 : index
    %29 = vector.load %arg8[%c0_21, %c0_22, %c0_23] : memref<1x1x512xf32, #tpu.memory_space<vmem>>, vector<1x1x512xf32>
    %30 = vector.shape_cast %29 : vector<1x1x512xf32> to vector<1x512xf32>
    %31 = vector.shape_cast %28 : vector<1x512xf32> to vector<1x1x512xf32>
    tpu.vector_store %arg8[%c0_21, %c0_22, %c0_23], %31 {strides = array<i32>} : memref<1x1x512xf32, #tpu.memory_space<vmem>>, vector<1x1x512xf32>,
    return
  }
  func.func @transform_0(%arg0: i32, %arg1: i32) -> (i32, i32, i32) {
    %c0_i32 = arith.constant 0 : i32
    %c0_i32_0 = arith.constant 0 : i32
    return %arg0, %arg1, %c0_i32 : i32, i32, i32
  }
  func.func @transform_1(%arg0: i32, %arg1: i32) -> (i32, i32) {
    %c0_i32 = arith.constant 0 : i32
    %c0_i32_0 = arith.constant 0 : i32
    %c0_i32_1 = arith.constant 0 : i32
    return %c0_i32, %c0_i32_0 : i32, i32
  }
  func.func @transform_2(%arg0: i32, %arg1: i32) -> (i32, i32) {
    %c0_i32 = arith.constant 0 : i32
    %c0_i32_0 = arith.constant 0 : i32
    %c0_i32_1 = arith.constant 0 : i32
    return %c0_i32, %c0_i32_0 : i32, i32
  }
  func.func @transform_3(%arg0: i32, %arg1: i32) -> (i32, i32) {
    %c0_i32 = arith.constant 0 : i32
    %c0_i32_0 = arith.constant 0 : i32
    %c0_i32_1 = arith.constant 0 : i32
    return %c0_i32, %c0_i32_0 : i32, i32
  }
  func.func @transform_4(%arg0: i32, %arg1: i32) -> (i32, i32) {
    %c0_i32 = arith.constant 0 : i32
    %c0_i32_0 = arith.constant 0 : i32
    %c0_i32_1 = arith.constant 0 : i32
    return %c0_i32, %c0_i32_0 : i32, i32
  }
  func.func @transform_5(%arg0: i32, %arg1: i32) -> (i32, i32, i32) {
    %c0_i32 = arith.constant 0 : i32
    %c0_i32_0 = arith.constant 0 : i32
    return %arg0, %c0_i32, %arg1 : i32, i32, i32
  }
  func.func @transform_6(%arg0: i32, %arg1: i32) -> (i32, i32, i32) {
    %c0_i32 = arith.constant 0 : i32
    %c0_i32_0 = arith.constant 0 : i32
    %c0_i32_1 = arith.constant 0 : i32
    return %arg0, %c0_i32, %c0_i32_0 : i32, i32, i32
  }
}

module attributes {stable_mosaic.version = 11 : i64} {
  func.func @_head_kernel(%arg0: i32, %arg1: memref<2x512xf32, #tpu.memory_space<vmem>>, %arg2: memref<512x256xf32, #tpu.memory_space<vmem>>, %arg3: memref<1x256xf32, #tpu.memory_space<vmem>>, %arg4: memref<256x128xf32, #tpu.memory_space<vmem>>, %arg5: memref<1x128xf32, #tpu.memory_space<vmem>>, %arg6: memref<128x128xf32, #tpu.memory_space<vmem>>, %arg7: memref<1x128xf32, #tpu.memory_space<vmem>>, %arg8: memref<2x128xf32, #tpu.memory_space<vmem>>) attributes {dimension_semantics = [#tpu.dimension_semantics<arbitrary>], iteration_bounds = array<i64: 1>, scalar_prefetch = 0 : i64, scratch_operands = 0 : i64, tpu.core_type = #tpu.core_type<tc>, window_params = [{pipeline_mode = #tpu.pipeline_mode<synchronous>, transform_indices = @transform_0, window_bounds = array<i64: 2, 512>}, {pipeline_mode = #tpu.pipeline_mode<synchronous>, transform_indices = @transform_1, window_bounds = array<i64: 512, 256>}, {pipeline_mode = #tpu.pipeline_mode<synchronous>, transform_indices = @transform_2, window_bounds = array<i64: 1, 256>}, {pipeline_mode = #tpu.pipeline_mode<synchronous>, transform_indices = @transform_3, window_bounds = array<i64: 256, 128>}, {pipeline_mode = #tpu.pipeline_mode<synchronous>, transform_indices = @transform_4, window_bounds = array<i64: 1, 128>}, {pipeline_mode = #tpu.pipeline_mode<synchronous>, transform_indices = @transform_5, window_bounds = array<i64: 128, 128>}, {pipeline_mode = #tpu.pipeline_mode<synchronous>, transform_indices = @transform_6, window_bounds = array<i64: 1, 128>}, {pipeline_mode = #tpu.pipeline_mode<synchronous>, transform_indices = @transform_7, window_bounds = array<i64: 2, 128>}]} {
    %c0 = arith.constant 0 : index
    %c0_0 = arith.constant 0 : index
    %0 = vector.load %arg1[%c0, %c0_0] : memref<2x512xf32, #tpu.memory_space<vmem>>, vector<2x512xf32>
    %c0_1 = arith.constant 0 : index
    %c0_2 = arith.constant 0 : index
    %1 = vector.load %arg2[%c0_1, %c0_2] : memref<512x256xf32, #tpu.memory_space<vmem>>, vector<512x256xf32>
    %cst = arith.constant dense<0.000000e+00> : vector<2x256xf32>
    %2 = tpu.matmul %0, %1, %cst {dimension_numbers = #tpu.dot_dimension_numbers<[1], [0], [0], [1], [0, 0, 1, 1], [], []>} : vector<2x512xf32>, vector<512x256xf32>, vector<2x256xf32> -> vector<2x256xf32>
    %c0_3 = arith.constant 0 : index
    %c0_4 = arith.constant 0 : index
    %3 = vector.load %arg3[%c0_3, %c0_4] : memref<1x256xf32, #tpu.memory_space<vmem>>, vector<1x256xf32>
    %4 = vector.broadcast %3 : vector<1x256xf32> to vector<2x256xf32>
    %5 = arith.addf %2, %4 : vector<2x256xf32>
    %cst_5 = arith.constant 0.000000e+00 : f32
    %6 = vector.broadcast %cst_5 : f32 to vector<2x256xf32>
    %7 = arith.maximumf %5, %6 : vector<2x256xf32>
    %c0_6 = arith.constant 0 : index
    %c0_7 = arith.constant 0 : index
    %8 = vector.load %arg4[%c0_6, %c0_7] : memref<256x128xf32, #tpu.memory_space<vmem>>, vector<256x128xf32>
    %cst_8 = arith.constant dense<0.000000e+00> : vector<2x128xf32>
    %9 = tpu.matmul %7, %8, %cst_8 {dimension_numbers = #tpu.dot_dimension_numbers<[1], [0], [0], [1], [0, 0, 1, 1], [], []>} : vector<2x256xf32>, vector<256x128xf32>, vector<2x128xf32> -> vector<2x128xf32>
    %c0_9 = arith.constant 0 : index
    %c0_10 = arith.constant 0 : index
    %10 = vector.load %arg5[%c0_9, %c0_10] : memref<1x128xf32, #tpu.memory_space<vmem>>, vector<1x128xf32>
    %11 = vector.broadcast %10 : vector<1x128xf32> to vector<2x128xf32>
    %12 = arith.addf %9, %11 : vector<2x128xf32>
    %cst_11 = arith.constant 0.000000e+00 : f32
    %13 = vector.broadcast %cst_11 : f32 to vector<2x128xf32>
    %14 = arith.maximumf %12, %13 : vector<2x128xf32>
    %c0_12 = arith.constant 0 : index
    %c0_13 = arith.constant 0 : index
    %15 = vector.load %arg6[%c0_12, %c0_13] : memref<128x128xf32, #tpu.memory_space<vmem>>, vector<128x128xf32>
    %cst_14 = arith.constant dense<0.000000e+00> : vector<2x128xf32>
    %16 = tpu.matmul %14, %15, %cst_14 {dimension_numbers = #tpu.dot_dimension_numbers<[1], [0], [0], [1], [0, 0, 1, 1], [], []>} : vector<2x128xf32>, vector<128x128xf32>, vector<2x128xf32> -> vector<2x128xf32>
    %c0_15 = arith.constant 0 : index
    %c0_16 = arith.constant 0 : index
    %17 = vector.load %arg7[%c0_15, %c0_16] : memref<1x128xf32, #tpu.memory_space<vmem>>, vector<1x128xf32>
    %18 = vector.broadcast %17 : vector<1x128xf32> to vector<2x128xf32>
    %19 = arith.addf %16, %18 : vector<2x128xf32>
    %c0_17 = arith.constant 0 : index
    %c0_18 = arith.constant 0 : index
    %20 = vector.load %arg8[%c0_17, %c0_18] : memref<2x128xf32, #tpu.memory_space<vmem>>, vector<2x128xf32>
    tpu.vector_store %arg8[%c0_17, %c0_18], %19 {strides = array<i32>} : memref<2x128xf32, #tpu.memory_space<vmem>>, vector<2x128xf32>,
    return
  }
  func.func @transform_0(%arg0: i32) -> (i32, i32) {
    %c0_i32 = arith.constant 0 : i32
    %c0_i32_0 = arith.constant 0 : i32
    %c0_i32_1 = arith.constant 0 : i32
    return %c0_i32, %c0_i32_0 : i32, i32
  }
  func.func @transform_1(%arg0: i32) -> (i32, i32) {
    %c0_i32 = arith.constant 0 : i32
    %c0_i32_0 = arith.constant 0 : i32
    %c0_i32_1 = arith.constant 0 : i32
    return %c0_i32, %c0_i32_0 : i32, i32
  }
  func.func @transform_2(%arg0: i32) -> (i32, i32) {
    %c0_i32 = arith.constant 0 : i32
    %c0_i32_0 = arith.constant 0 : i32
    %c0_i32_1 = arith.constant 0 : i32
    return %c0_i32, %c0_i32_0 : i32, i32
  }
  func.func @transform_3(%arg0: i32) -> (i32, i32) {
    %c0_i32 = arith.constant 0 : i32
    %c0_i32_0 = arith.constant 0 : i32
    %c0_i32_1 = arith.constant 0 : i32
    return %c0_i32, %c0_i32_0 : i32, i32
  }
  func.func @transform_4(%arg0: i32) -> (i32, i32) {
    %c0_i32 = arith.constant 0 : i32
    %c0_i32_0 = arith.constant 0 : i32
    %c0_i32_1 = arith.constant 0 : i32
    return %c0_i32, %c0_i32_0 : i32, i32
  }
  func.func @transform_5(%arg0: i32) -> (i32, i32) {
    %c0_i32 = arith.constant 0 : i32
    %c0_i32_0 = arith.constant 0 : i32
    %c0_i32_1 = arith.constant 0 : i32
    return %c0_i32, %c0_i32_0 : i32, i32
  }
  func.func @transform_6(%arg0: i32) -> (i32, i32) {
    %c0_i32 = arith.constant 0 : i32
    %c0_i32_0 = arith.constant 0 : i32
    %c0_i32_1 = arith.constant 0 : i32
    return %c0_i32, %c0_i32_0 : i32, i32
  }
  func.func @transform_7(%arg0: i32) -> (i32, i32) {
    %c0_i32 = arith.constant 0 : i32
    %c0_i32_0 = arith.constant 0 : i32
    %c0_i32_1 = arith.constant 0 : i32
    return %c0_i32, %c0_i32_0 : i32, i32
  }
}

</mosaic_0001>

<bundles_post_ra>
// kernel: ridbnet_forward.3
= control target key start
LH: loop header
LB: loop body
LE: loop exit
PB: predicated region body
PF: predicated region fallthrough
CT: control target
= control target key end

     0   :  { %s1277_s0 = inlined_call_operand.vmem [shape: f32[2,512], index: 0, kind: input, shape index: {}]   ;;  %s1278_s1 = inlined_call_operand.vmem [shape: f32[512,256], index: 1, kind: input, shape index: {}]   ;;  %s1279_s2 = inlined_call_operand.vmem [shape: f32[1,256], index: 2, kind: input, shape index: {}]   ;;  %s1280_s3 = inlined_call_operand.vmem [shape: f32[256,128], index: 3, kind: input, shape index: {}]   ;;  %s1281_s4 = inlined_call_operand.vmem [shape: f32[1,128], index: 4, kind: input, shape index: {}]   ;;  %s1282_s5 = inlined_call_operand.vmem [shape: f32[128,128], index: 5, kind: input, shape index: {}]   ;;  %s1283_s6 = inlined_call_operand.vmem [shape: f32[1,128], index: 6, kind: input, shape index: {}]   ;;  %s1284_s7 = inlined_call_operand.hbm [shape: f32[2,128], index: 7, kind: output, shape index: {}]  }
   0x1   :  { %v59_v0 = vld [vmem:[%s1278_s1 + $0xf8] sm:$0xff]  ;;  %v58_v2 = vld [vmem:[%s1278_s1 + $0xf0] sm:$0xff]  ;;  %v57_v4 = vld [vmem:[%s1278_s1 + $0xe8] sm:$0xff] }
   0x2   :  { %v123_v1 = vld [vmem:[%s1278_s1 + $0x2f8] sm:$0xff]  ;;  %190 = vmatprep.subr.mxu0 %v59_v0  ;;  %v122_v3 = vld [vmem:[%s1278_s1 + $0x2f0] sm:$0xff]  ;;  %v121_v5 = vld [vmem:[%s1278_s1 + $0x2e8] sm:$0xff] }
   0x3   :  { %261 = vmatprep.subr.mxu1 %v123_v1  ;;  %191 = vmatpush1.msra.mxu0 %v58_v2  ;;  %v56_v6 = vld [vmem:[%s1278_s1 + $0xe0] sm:$0xff]  ;;  %v55_v8 = vld [vmem:[%s1278_s1 + $0xd8] sm:$0xff]  ;;  %v54_v10 = vld [vmem:[%s1278_s1 + $0xd0] sm:$0xff] }
   0x4   :  { %262 = vmatpush1.msra.mxu1 %v122_v3  ;;  %v120_v7 = vld [vmem:[%s1278_s1 + $0x2e0] sm:$0xff]  ;;  %192 = vmatprep.subr.mxu0 %v57_v4  ;;  %v119_v9 = vld [vmem:[%s1278_s1 + $0x2d8] sm:$0xff]  ;;  %v118_v11 = vld [vmem:[%s1278_s1 + $0x2d0] sm:$0xff] }
   0x5   :  { %263 = vmatprep.subr.mxu1 %v121_v5  ;;  %193 = vmatpush1.msra.mxu0 %v56_v6  ;;  %v53_v12 = vld [vmem:[%s1278_s1 + $0xc8] sm:$0xff]  ;;  %v52_v14 = vld [vmem:[%s1278_s1 + $0xc0] sm:$0xff]  ;;  %v51_v16 = vld [vmem:[%s1278_s1 + $0xb8] sm:$0xff] }
   0x6   :  { %264 = vmatpush1.msra.mxu1 %v120_v7  ;;  %v117_v13 = vld [vmem:[%s1278_s1 + $0x2c8] sm:$0xff]  ;;  %194 = vmatprep.subr.mxu0 %v55_v8  ;;  %v116_v15 = vld [vmem:[%s1278_s1 + $0x2c0] sm:$0xff]  ;;  %v115_v17 = vld [vmem:[%s1278_s1 + $0x2b8] sm:$0xff] }
   0x7   :  { %265 = vmatprep.subr.mxu1 %v119_v9  ;;  %195 = vmatpush1.msra.mxu0 %v54_v10  ;;  %v50_v18 = vld [vmem:[%s1278_s1 + $0xb0] sm:$0xff]  ;;  %v49_v20 = vld [vmem:[%s1278_s1 + $0xa8] sm:$0xff]  ;;  %v48_v22 = vld [vmem:[%s1278_s1 + $0xa0] sm:$0xff] }
   0x8   :  { %266 = vmatpush1.msra.mxu1 %v118_v11  ;;  %196 = vmatprep.subr.mxu0 %v53_v12  ;;  %v114_v19 = vld [vmem:[%s1278_s1 + $0x2b0] sm:$0xff]  ;;  %v113_v21 = vld [vmem:[%s1278_s1 + $0x2a8] sm:$0xff]  ;;  %v112_v23 = vld [vmem:[%s1278_s1 + $0x2a0] sm:$0xff] }
   0x9   :  { %267 = vmatprep.subr.mxu1 %v117_v13  ;;  %197 = vmatpush1.msra.mxu0 %v52_v14  ;;  %v47_v24 = vld [vmem:[%s1278_s1 + $0x98] sm:$0xff]  ;;  %v46_v26 = vld [vmem:[%s1278_s1 + $0x90] sm:$0xff]  ;;  %v45_v28 = vld [vmem:[%s1278_s1 + $0x88] sm:$0xff] }
   0xa   :  { %268 = vmatpush1.msra.mxu1 %v116_v15  ;;  %198 = vmatprep.subr.mxu0 %v51_v16  ;;  %v111_v25 = vld [vmem:[%s1278_s1 + $0x298] sm:$0xff]  ;;  %v110_v27 = vld [vmem:[%s1278_s1 + $0x290] sm:$0xff]  ;;  %v109_v29 = vld [vmem:[%s1278_s1 + $0x288] sm:$0xff] }
   0xb   :  { %269 = vmatprep.subr.mxu1 %v115_v17  ;;  %199 = vmatpush1.msra.mxu0 %v50_v18  ;;  %v44_v30 = vld [vmem:[%s1278_s1 + $0x80] sm:$0xff]  ;;  %v43_v32 = vld [vmem:[%s1278_s1 + $0x78] sm:$0xff]  ;;  %v42_v34 = vld [vmem:[%s1278_s1 + $0x70] sm:$0xff] }
   0xc   :  { %270 = vmatpush1.msra.mxu1 %v114_v19  ;;  %200 = vmatprep.subr.mxu0 %v49_v20  ;;  %v108_v31 = vld [vmem:[%s1278_s1 + $0x280] sm:$0xff]  ;;  %v107_v33 = vld [vmem:[%s1278_s1 + $0x278] sm:$0xff]  ;;  %v106_v35 = vld [vmem:[%s1278_s1 + $0x270] sm:$0xff] }
   0xd   :  { %271 = vmatprep.subr.mxu1 %v113_v21  ;;  %201 = vmatpush1.msra.mxu0 %v48_v22  ;;  %v41_v36 = vld [vmem:[%s1278_s1 + $0x68] sm:$0xff]  ;;  %v40_v38 = vld [vmem:[%s1278_s1 + $0x60] sm:$0xff]  ;;  %v39_v40 = vld [vmem:[%s1278_s1 + $0x58] sm:$0xff] }
   0xe   :  { %272 = vmatpush1.msra.mxu1 %v112_v23  ;;  %202 = vmatprep.subr.mxu0 %v47_v24  ;;  %v105_v37 = vld [vmem:[%s1278_s1 + $0x268] sm:$0xff]  ;;  %v104_v39 = vld [vmem:[%s1278_s1 + $0x260] sm:$0xff]  ;;  %v103_v41 = vld [vmem:[%s1278_s1 + $0x258] sm:$0xff] }
   0xf   :  { %273 = vmatprep.subr.mxu1 %v111_v25  ;;  %203 = vmatpush1.msra.mxu0 %v46_v26  ;;  %v38_v42 = vld [vmem:[%s1278_s1 + $0x50] sm:$0xff]  ;;  %v37_v44 = vld [vmem:[%s1278_s1 + $0x48] sm:$0xff]  ;;  %v36_v46 = vld [vmem:[%s1278_s1 + $0x40] sm:$0xff] }
  0x10   :  { %274 = vmatpush1.msra.mxu1 %v110_v27  ;;  %204 = vmatprep.subr.mxu0 %v45_v28  ;;  %v102_v43 = vld [vmem:[%s1278_s1 + $0x250] sm:$0xff]  ;;  %v101_v45 = vld [vmem:[%s1278_s1 + $0x248] sm:$0xff]  ;;  %v100_v47 = vld [vmem:[%s1278_s1 + $0x240] sm:$0xff] }
  0x11   :  { %275 = vmatprep.subr.mxu1 %v109_v29  ;;  %205 = vmatpush1.msra.mxu0 %v44_v30  ;;  %v35_v48 = vld [vmem:[%s1278_s1 + $0x38] sm:$0xff]  ;;  %v34_v50 = vld [vmem:[%s1278_s1 + $0x30] sm:$0xff]  ;;  %v33_v52 = vld [vmem:[%s1278_s1 + $0x28] sm:$0xff]  ;;  %v158_v30 = vlaneseq }
  0x12   :  { %276 = vmatpush1.msra.mxu1 %v108_v31  ;;  %206 = vmatprep.subr.mxu0 %v43_v32  ;;  %v99_v49 = vld [vmem:[%s1278_s1 + $0x238] sm:$0xff]  ;;  %v98_v51 = vld [vmem:[%s1278_s1 + $0x230] sm:$0xff]  ;;  %v97_v53 = vld [vmem:[%s1278_s1 + $0x228] sm:$0xff]  ;;  %v668_v31 = vmov 1983009808  }
  0x13   :  { %277 = vmatprep.subr.mxu1 %v107_v33  ;;  %207 = vmatpush1.msra.mxu0 %v42_v34  ;;  %v32_v54 = vld [vmem:[%s1278_s1 + $0x20] sm:$0xff]  ;;  %v31_v56 = vld [vmem:[%s1278_s1 + $0x18] sm:$0xff]  ;;  %v30_v58 = vld [vmem:[%s1278_s1 + $0x10] sm:$0xff]  ;;  %v171_v32 = vunpack.c.l.s4 %v668_v31 }
  0x14   :  { %278 = vmatpush1.msra.mxu1 %v106_v35  ;;  %208 = vmatprep.subr.mxu0 %v41_v36  ;;  %v96_v55 = vld [vmem:[%s1278_s1 + $0x220] sm:$0xff]  ;;  %v95_v57 = vld [vmem:[%s1278_s1 + $0x218] sm:$0xff]  ;;  %v94_v59 = vld [vmem:[%s1278_s1 + $0x210] sm:$0xff] }
  0x15   :  { %279 = vmatprep.subr.mxu1 %v105_v37  ;;  %209 = vmatpush1.msra.mxu0 %v40_v38  ;;  %v29_v60 = vld [vmem:[%s1278_s1 + $0x8] sm:$0xff]  ;;  %v28_v62 = vld [vmem:[%s1278_s1] sm:$0xff]  ;;  %v91_v0 = vld [vmem:[%s1278_s1 + $0x1f8] sm:$0xff] }
  0x16   :  { %280 = vmatpush1.msra.mxu1 %v104_v39  ;;  %210 = vmatprep.subr.mxu0 %v39_v40  ;;  %v93_v61 = vld [vmem:[%s1278_s1 + $0x208] sm:$0xff]  ;;  %v92_v63 = vld [vmem:[%s1278_s1 + $0x200] sm:$0xff]  ;;  %v155_v1 = vld [vmem:[%s1278_s1 + $0x3f8] sm:$0xff] }
  0x17   :  { %281 = vmatprep.subr.mxu1 %v103_v41  ;;  %211 = vmatpush1.msra.mxu0 %v38_v42  ;;  %v90_v2 = vld [vmem:[%s1278_s1 + $0x1f0] sm:$0xff]  ;;  %v89_v4 = vld [vmem:[%s1278_s1 + $0x1e8] sm:$0xff]  ;;  %v88_v6 = vld [vmem:[%s1278_s1 + $0x1e0] sm:$0xff]  ;;  %v1018_v41 = vshrl.u32 %v158_v30, 7  ;;  %v172_v42 = vunpack.c.0.s8 %v171_v32 }
  0x18   :  { %282 = vmatpush1.msra.mxu1 %v102_v43  ;;  %212 = vmatprep.subr.mxu0 %v37_v44  ;;  %v154_v3 = vld [vmem:[%s1278_s1 + $0x3f0] sm:$0xff]  ;;  %v153_v5 = vld [vmem:[%s1278_s1 + $0x3e8] sm:$0xff]  ;;  %v152_v7 = vld [vmem:[%s1278_s1 + $0x3e0] sm:$0xff] }
  0x19   :  { %283 = vmatprep.subr.mxu1 %v101_v45  ;;  %213 = vmatpush1.msra.mxu0 %v36_v46  ;;  %v87_v8 = vld [vmem:[%s1278_s1 + $0x1d8] sm:$0xff]  ;;  %v86_v10 = vld [vmem:[%s1278_s1 + $0x1d0] sm:$0xff]  ;;  %v85_v12 = vld [vmem:[%s1278_s1 + $0x1c8] sm:$0xff] }
  0x1a   :  { %284 = vmatpush1.msra.mxu1 %v100_v47  ;;  %214 = vmatprep.subr.mxu0 %v35_v48  ;;  %v151_v9 = vld [vmem:[%s1278_s1 + $0x3d8] sm:$0xff]  ;;  %v150_v11 = vld [vmem:[%s1278_s1 + $0x3d0] sm:$0xff]  ;;  %v149_v13 = vld [vmem:[%s1278_s1 + $0x3c8] sm:$0xff] }
  0x1b   :  { %285 = vmatprep.subr.mxu1 %v99_v49  ;;  %215 = vmatpush1.msra.mxu0 %v34_v50  ;;  %v84_v14 = vld [vmem:[%s1278_s1 + $0x1c0] sm:$0xff]  ;;  %v83_v16 = vld [vmem:[%s1278_s1 + $0x1b8] sm:$0xff]  ;;  %v82_v18 = vld [vmem:[%s1278_s1 + $0x1b0] sm:$0xff] }
  0x1c   :  { %286 = vmatpush1.msra.mxu1 %v98_v51  ;;  %216 = vmatprep.subr.mxu0 %v33_v52  ;;  %v148_v15 = vld [vmem:[%s1278_s1 + $0x3c0] sm:$0xff]  ;;  %v147_v17 = vld [vmem:[%s1278_s1 + $0x3b8] sm:$0xff]  ;;  %v146_v19 = vld [vmem:[%s1278_s1 + $0x3b0] sm:$0xff] }
  0x1d   :  { %287 = vmatprep.subr.mxu1 %v97_v53  ;;  %217 = vmatpush1.msra.mxu0 %v32_v54  ;;  %v81_v20 = vld [vmem:[%s1278_s1 + $0x1a8] sm:$0xff]  ;;  %v80_v22 = vld [vmem:[%s1278_s1 + $0x1a0] sm:$0xff]  ;;  %v79_v24 = vld [vmem:[%s1278_s1 + $0x198] sm:$0xff] }
  0x1e   :  { %288 = vmatpush1.msra.mxu1 %v96_v55  ;;  %218 = vmatprep.subr.mxu0 %v31_v56  ;;  %v145_v21 = vld [vmem:[%s1278_s1 + $0x3a8] sm:$0xff]  ;;  %v144_v23 = vld [vmem:[%s1278_s1 + $0x3a0] sm:$0xff]  ;;  %v143_v25 = vld [vmem:[%s1278_s1 + $0x398] sm:$0xff] }
  0x1f   :  { %289 = vmatprep.subr.mxu1 %v95_v57  ;;  %219 = vmatpush1.msra.mxu0 %v30_v58  ;;  %v78_v26 = vld [vmem:[%s1278_s1 + $0x190] sm:$0xff]  ;;  %v77_v28 = vld [vmem:[%s1278_s1 + $0x188] sm:$0xff]  ;;  %v76_v33 = vld [vmem:[%s1278_s1 + $0x180] sm:$0xff] }
  0x20   :  { %290 = vmatpush1.msra.mxu1 %v94_v59  ;;  %220 = vmatprep.subr.mxu0 %v29_v60  ;;  %v142_v27 = vld [vmem:[%s1278_s1 + $0x390] sm:$0xff]  ;;  %v141_v29 = vld [vmem:[%s1278_s1 + $0x388] sm:$0xff]  ;;  %v140_v34 = vld [vmem:[%s1278_s1 + $0x380] sm:$0xff] }
  0x21   :  { %291 = vmatprep.subr.mxu1 %v93_v61  ;;  %221 = vmatpush1.msra.mxu0 %v28_v62  ;;  %v75_v35 = vld [vmem:[%s1278_s1 + $0x178] sm:$0xff]  ;;  %v74_v37 = vld [vmem:[%s1278_s1 + $0x170] sm:$0xff]  ;;  %v73_v39 = vld [vmem:[%s1278_s1 + $0x168] sm:$0xff] }
  0x22   :  { %292 = vmatpush1.msra.mxu1 %v92_v63  ;;  %222 = vmatprep.subr.mxu0 %v91_v0  ;;  %v139_v36 = vld [vmem:[%s1278_s1 + $0x378] sm:$0xff]  ;;  %v138_v38 = vld [vmem:[%s1278_s1 + $0x370] sm:$0xff]  ;;  %v137_v40 = vld [vmem:[%s1278_s1 + $0x368] sm:$0xff] }
  0x23   :  { %293 = vmatprep.subr.mxu1 %v155_v1  ;;  %223 = vmatpush2.msra.mxu0 %v90_v2  ;;  %v72_v43 = vld [vmem:[%s1278_s1 + $0x160] sm:$0xff]  ;;  %v71_v45 = vld [vmem:[%s1278_s1 + $0x158] sm:$0xff] }
  0x24   :  { %294 = vmatpush2.msra.mxu1 %v154_v3  ;;  %224 = vmatprep.subr.mxu0 %v89_v4  ;;  %v136_v44 = vld [vmem:[%s1278_s1 + $0x360] sm:$0xff]  ;;  %v135_v46 = vld [vmem:[%s1278_s1 + $0x358] sm:$0xff] }
  0x25   :  { %295 = vmatprep.subr.mxu1 %v153_v5  ;;  %225 = vmatpush2.msra.mxu0 %v88_v6  ;;  %v27_v47 = vld [vmem:[%s1277_s0] sm:$0xff] }
  0x26   :  { %296 = vmatpush2.msra.mxu1 %v152_v7  ;;  %226 = vmatprep.subr.mxu0 %v87_v8 }
  0x27   :  { %297 = vmatprep.subr.mxu1 %v151_v9  ;;  %227 = vmatpush2.msra.mxu0 %v86_v10 }
  0x28   :  { %298 = vmatpush2.msra.mxu1 %v150_v11  ;;  %228 = vmatprep.subr.mxu0 %v85_v12 }
  0x29   :  { %299 = vmatprep.subr.mxu1 %v149_v13  ;;  %229 = vmatpush2.msra.mxu0 %v84_v14 }
  0x2a   :  { %300 = vmatpush2.msra.mxu1 %v148_v15  ;;  %230 = vmatprep.subr.mxu0 %v83_v16 }
  0x2b   :  { %301 = vmatprep.subr.mxu1 %v147_v17  ;;  %231 = vmatpush2.msra.mxu0 %v82_v18 }
  0x2c   :  { %302 = vmatpush2.msra.mxu1 %v146_v19  ;;  %232 = vmatprep.subr.mxu0 %v81_v20 }
  0x2d   :  { %303 = vmatprep.subr.mxu1 %v145_v21  ;;  %233 = vmatpush2.msra.mxu0 %v80_v22 }
  0x2e   :  { %304 = vmatpush2.msra.mxu1 %v144_v23  ;;  %234 = vmatprep.subr.mxu0 %v79_v24 }
  0x2f   :  { %305 = vmatprep.subr.mxu1 %v143_v25  ;;  %235 = vmatpush2.msra.mxu0 %v78_v26 }
  0x30   :  { %306 = vmatpush2.msra.mxu1 %v142_v27  ;;  %236 = vmatprep.subr.mxu0 %v77_v28 }
  0x31   :  { %307 = vmatprep.subr.mxu1 %v141_v29  ;;  %237 = vmatpush2.msra.mxu0 %v76_v33 }
  0x32   :  { %308 = vmatpush2.msra.mxu1 %v140_v34  ;;  %238 = vmatprep.subr.mxu0 %v75_v35 }
  0x33   :  { %309 = vmatprep.subr.mxu1 %v139_v36  ;;  %239 = vmatpush2.msra.mxu0 %v74_v37 }
  0x34   :  { %310 = vmatpush2.msra.mxu1 %v138_v38 }
  0x35   :  { %12 = vsyncpa [#allocation3], 0  ;;  %240 = vmatprep.subr.mxu0 %v73_v39  ;;  %311 = vmatprep.subr.mxu1 %v137_v40  ;;  %v70_v48 = vld [vmem:[%s1278_s1 + $0x150] sm:$0xff]  ;;  %v69_v50 = vld [vmem:[%s1278_s1 + $0x148] sm:$0xff]  ;;  %v175_v52 = vsub.s32 %v172_v42, %v1018_v41  ;;  %v169_v55 = vcombine.high %v27_v47, %v27_v47  ;;  %vm670_vm0 = vmmov 0   ;;  %s671_s26 = smov [#allocation2]  }
  0x36   :  { %v134_v49 = vld [vmem:[%s1278_s1 + $0x350] sm:$0xff]  ;;  %241 = vmatpush2.msra.mxu0 %v72_v43  ;;  %312 = vmatpush2.msra.mxu1 %v136_v44  ;;  %v133_v51 = vld [vmem:[%s1278_s1 + $0x348] sm:$0xff]  ;;  %v68_v53 = vld [vmem:[%s1278_s1 + $0x140] sm:$0xff] }
  0x37   :  { %242 = vmatprep.subr.mxu0 %v71_v45  ;;  %313 = vmatprep.subr.mxu1 %v135_v46  ;;  %v132_v54 = vld [vmem:[%s1278_s1 + $0x340] sm:$0xff]  ;;  %v67_v56 = vld [vmem:[%s1278_s1 + $0x138] sm:$0xff]  ;;  %v66_v58 = vld [vmem:[%s1278_s1 + $0x130] sm:$0xff]  ;;  %v176_v62 = vrot.slane %v27_v47, %v175_v52  ;;  %v183_v1 = vrot.slane %v169_v55, %v175_v52  ;;  %v669_v46 = vmov 0.0  }
  0x38   :  { %243 = vmatpush2.msra.mxu0 %v70_v48  ;;  %314 = vmatpush2.msra.mxu1 %v134_v49  ;;  %v131_v57 = vld [vmem:[%s1278_s1 + $0x338] sm:$0xff]  ;;  %v130_v59 = vld [vmem:[%s1278_s1 + $0x330] sm:$0xff]  ;;  %v65_v60 = vld [vmem:[%s1278_s1 + $0x128] sm:$0xff] }
  0x39   :  { %244 = vmatprep.subr.mxu0 %v69_v50  ;;  %315 = vmatprep.subr.mxu1 %v133_v51  ;;  %v129_v61 = vld [vmem:[%s1278_s1 + $0x328] sm:$0xff]  ;;  %v64_v63 = vld [vmem:[%s1278_s1 + $0x120] sm:$0xff]  ;;  %v63_v2 = vld [vmem:[%s1278_s1 + $0x118] sm:$0xff]  ;;  %v184_v8 = vcombine.high %v176_v62, %v176_v62  ;;  %v185_v10 = vcombine.high %v183_v1, %v183_v1 }
  0x3a   :  { %245 = vmatpush2.msra.mxu0 %v68_v53  ;;  %316 = vmatpush2.msra.mxu1 %v132_v54  ;;  %v128_v0 = vld [vmem:[%s1278_s1 + $0x320] sm:$0xff]  ;;  %v127_v3 = vld [vmem:[%s1278_s1 + $0x318] sm:$0xff]  ;;  %v62_v4 = vld [vmem:[%s1278_s1 + $0x110] sm:$0xff] }
  0x3b   :  { %246 = vmatprep.subr.mxu0 %v67_v56  ;;  %317 = vmatprep.subr.mxu1 %v131_v57  ;;  %v126_v5 = vld [vmem:[%s1278_s1 + $0x310] sm:$0xff]  ;;  %v61_v6 = vld [vmem:[%s1278_s1 + $0x108] sm:$0xff]  ;;  %v60_v9 = vld [vmem:[%s1278_s1 + $0x100] sm:$0xff]  ;;  %v160_v57 = vsub.s32 0, %v1018_v41 }
  0x3c   :  { %247 = vmatpush2.msra.mxu0 %v66_v58  ;;  %318 = vmatpush2.msra.mxu1 %v130_v59  ;;  %v125_v7 = vld [vmem:[%s1278_s1 + $0x308] sm:$0xff]  ;;  %v124_v11 = vld [vmem:[%s1278_s1 + $0x300] sm:$0xff]  ;;  %v365_v12 = vld [vmem:[%s1280_s3 + $0xf8] sm:$0xff]  ;;  %v164_v59 = vsub.s32 1, %v1018_v41 }
  0x3d   :  { %248 = vmatprep.subr.mxu0 %v65_v60  ;;  %319 = vmatprep.subr.mxu1 %v129_v61  ;;  %v349_v13 = vld [vmem:[%s1280_s3 + $0x78] sm:$0xff]  ;;  %v364_v14 = vld [vmem:[%s1280_s3 + $0xf0] sm:$0xff]  ;;  %v363_v16 = vld [vmem:[%s1280_s3 + $0xe8] sm:$0xff] }
  0x3e   :  { %249 = vmatpush2.msra.mxu0 %v64_v63  ;;  %320 = vmatpush2.msra.mxu1 %v128_v0  ;;  %v348_v15 = vld [vmem:[%s1280_s3 + $0x70] sm:$0xff]  ;;  %v347_v17 = vld [vmem:[%s1280_s3 + $0x68] sm:$0xff]  ;;  %v362_v18 = vld [vmem:[%s1280_s3 + $0xe0] sm:$0xff] }
  0x3f   :  { %250 = vmatprep.subr.mxu0 %v63_v2  ;;  %321 = vmatprep.subr.mxu1 %v127_v3  ;;  %v346_v19 = vld [vmem:[%s1280_s3 + $0x60] sm:$0xff]  ;;  %v361_v20 = vld [vmem:[%s1280_s3 + $0xd8] sm:$0xff]  ;;  %v360_v22 = vld [vmem:[%s1280_s3 + $0xd0] sm:$0xff] }
  0x40   :  { %251 = vmatpush2.msra.mxu0 %v62_v4  ;;  %322 = vmatpush2.msra.mxu1 %v126_v5  ;;  %v345_v21 = vld [vmem:[%s1280_s3 + $0x58] sm:$0xff]  ;;  %v344_v23 = vld [vmem:[%s1280_s3 + $0x50] sm:$0xff]  ;;  %v359_v24 = vld [vmem:[%s1280_s3 + $0xc8] sm:$0xff] }
  0x41   :  { %252 = vmatprep.subr.mxu0 %v61_v6  ;;  %323 = vmatprep.subr.mxu1 %v125_v7  ;;  %v343_v25 = vld [vmem:[%s1280_s3 + $0x48] sm:$0xff]  ;;  %v358_v26 = vld [vmem:[%s1280_s3 + $0xc0] sm:$0xff]  ;;  %v357_v28 = vld [vmem:[%s1280_s3 + $0xb8] sm:$0xff] }
  0x42   :  { %253 = vmatpush2.msra.mxu0 %v60_v9  ;;  %254 = vmatprep.mubr.f32.mxu0 %v184_v8  ;;  %v342_v27 = vld [vmem:[%s1280_s3 + $0x40] sm:$0xff]  ;;  %v341_v29 = vld [vmem:[%s1280_s3 + $0x38] sm:$0xff]  ;;  %v356_v30 = vld [vmem:[%s1280_s3 + $0xb0] sm:$0xff] }
  0x43   :  { %324 = vmatpush2.msra.mxu1 %v124_v11  ;;  %325 = vmatprep.mubr.f32.mxu1 %v185_v10  ;;  %v340_v31 = vld [vmem:[%s1280_s3 + $0x30] sm:$0xff]  ;;  %v355_v32 = vld [vmem:[%s1280_s3 + $0xa8] sm:$0xff]  ;;  %v354_v34 = vld [vmem:[%s1280_s3 + $0xa0] sm:$0xff] }
  0x44   :  { %255 = vmatmul.mubr.f32.vlgmr.msra.gmra.mxu0 %v176_v62  ;;  %326 = vmatmul.mubr.f32.vlgmr.msra.gmra.mxu1 %v183_v1  ;;  %v339_v33 = vld [vmem:[%s1280_s3 + $0x28] sm:$0xff]  ;;  %v338_v35 = vld [vmem:[%s1280_s3 + $0x20] sm:$0xff]  ;;  %v353_v36 = vld [vmem:[%s1280_s3 + $0x98] sm:$0xff] }
  0x45   :  { %554 = vmatprep.subr.mxu0 %v365_v12  ;;  %v337_v37 = vld [vmem:[%s1280_s3 + $0x18] sm:$0xff]  ;;  %v352_v38 = vld [vmem:[%s1280_s3 + $0x90] sm:$0xff]  ;;  %v351_v40 = vld [vmem:[%s1280_s3 + $0x88] sm:$0xff]  ;;  %606 = vmatprep.subr.mxu1 %v669_v46 }
  0x46   :  { %555 = vmatpush3.msra.mxu0 %v349_v13  ;;  %v336_v39 = vld [vmem:[%s1280_s3 + $0x10] sm:$0xff]  ;;  %v335_v42 = vld [vmem:[%s1280_s3 + $0x8] sm:$0xff]  ;;  %v350_v43 = vld [vmem:[%s1280_s3 + $0x80] sm:$0xff]  ;;  %638 = vmatprep.mubr.msk.f32.mxu1 %vm670_vm0, %v669_v46 }
  0x47   :  { %556 = vmatprep.subr.mxu0 %v364_v14  ;;  %v334_v44 = vld [vmem:[%s1280_s3] sm:$0xff]  ;;  %v459_v45 = vld [vmem:[%s1282_s5 + $0x78] sm:$0xff]  ;;  %v458_v47 = vld [vmem:[%s1282_s5 + $0x70] sm:$0xff] }
  0x48   :  { %557 = vmatpush3.msra.mxu0 %v348_v15  ;;  %607 = vmatpush3.msra.mxu1 %v459_v45  ;;  %v457_v48 = vld [vmem:[%s1282_s5 + $0x68] sm:$0xff]  ;;  %v456_v49 = vld [vmem:[%s1282_s5 + $0x60] sm:$0xff]  ;;  %v455_v50 = vld [vmem:[%s1282_s5 + $0x58] sm:$0xff] }
  0x49   :  { %558 = vmatprep.subr.mxu0 %v363_v16  ;;  %608 = vmatprep.subr.mxu1 %v669_v46  ;;  %v454_v51 = vld [vmem:[%s1282_s5 + $0x50] sm:$0xff]  ;;  %v453_v52 = vld [vmem:[%s1282_s5 + $0x48] sm:$0xff]  ;;  %v452_v53 = vld [vmem:[%s1282_s5 + $0x40] sm:$0xff] }
  0x4a   :  { %559 = vmatpush3.msra.mxu0 %v347_v17  ;;  %609 = vmatpush3.msra.mxu1 %v458_v47  ;;  %v451_v54 = vld [vmem:[%s1282_s5 + $0x38] sm:$0xff]  ;;  %v450_v55 = vld [vmem:[%s1282_s5 + $0x30] sm:$0xff]  ;;  %v449_v56 = vld [vmem:[%s1282_s5 + $0x28] sm:$0xff] }
  0x4b   :  { %560 = vmatprep.subr.mxu0 %v362_v18  ;;  %610 = vmatprep.subr.mxu1 %v669_v46  ;;  %v156_v58 = vld [vmem:[%s1279_s2] sm:$0x3]  ;;  %v447_v41 = vld [vmem:[%s1282_s5 + $0x18] sm:$0xff]  ;;  %v446_v9 = vld [vmem:[%s1282_s5 + $0x10] sm:$0xff] }
  0x4c   :  { %561 = vmatpush3.msra.mxu0 %v346_v19  ;;  %611 = vmatpush3.msra.mxu1 %v457_v48  ;;  %v161_v60 = vrot.slane %v156_v58, %v160_v57  ;;  %v165_v61 = vrot.slane %v156_v58, %v164_v59  ;;  %v448_v8 = vld [vmem:[%s1282_s5 + $0x20] sm:$0xff]  ;;  %v445_v10 = vld [vmem:[%s1282_s5 + $0x8] sm:$0xff] }
  0x4d   :  { %562 = vmatprep.subr.mxu0 %v361_v20  ;;  %612 = vmatprep.subr.mxu1 %v669_v46  ;;  %v444_v11 = vld [vmem:[%s1282_s5] sm:$0xff]  ;;  %s544_s5 = sshll.u32 %s671_s26, 4  ;;  %s545_s5 = int_to_ptr.vmem [resolvable:$true] %s544_s5 }
  0x4e   :  { %563 = vmatpush3.msra.mxu0 %v345_v21  ;;  %613 = vmatpush3.msra.mxu1 %v456_v49  ;;  %v552_v13 = vld [vmem:[%s1281_s4] ss:$0 sm:$0xff]  ;;  %s646_s27 = scalar_lea.vmem %s545_s5, 32  ;;  %p651_p1 = scmp.lt.s32.totalorder %s545_s5, %s545_s5 }
  0x4f   :  { %564 = vmatprep.subr.mxu0 %v360_v22  ;;  %614 = vmatprep.subr.mxu1 %v669_v46  ;;  %v553_v18 = vld [vmem:[%s1283_s6] ss:$0 sm:$0xff]  ;;  %p647_p0 = scmp.ne.s32.totalorder %s545_s5, %s646_s27  ;;  %p652_p2 = scmp.lt.s32.totalorder %s646_s27, %s646_s27 }
  0x50   :  { %565 = vmatpush3.msra.mxu0 %v344_v23  ;;  %615 = vmatpush3.msra.mxu1 %v455_v50 }
  0x51   :  { %566 = vmatprep.subr.mxu0 %v359_v24  ;;  %616 = vmatprep.subr.mxu1 %v669_v46  ;;  %p653_p3 = por %p652_p2, %p651_p1 }
  0x52   :  { %567 = vmatpush3.msra.mxu0 %v343_v25  ;;  %617 = vmatpush3.msra.mxu1 %v454_v51 }
  0x53   :  { %568 = vmatprep.subr.mxu0 %v358_v26  ;;  %618 = vmatprep.subr.mxu1 %v669_v46  ;;  %p654_p4 = pnand %p653_p3, %p647_p0 }
  0x54   :  { %569 = vmatpush3.msra.mxu0 %v342_v27  ;;  %619 = vmatpush3.msra.mxu1 %v453_v52 }
  0x55   :  { %570 = vmatprep.subr.mxu0 %v357_v28  ;;  %620 = vmatprep.subr.mxu1 %v669_v46 }
  0x56   :  { %571 = vmatpush3.msra.mxu0 %v341_v29  ;;  %621 = vmatpush3.msra.mxu1 %v452_v53 }
  0x57   :  { %572 = vmatprep.subr.mxu0 %v356_v30  ;;  %622 = vmatprep.subr.mxu1 %v669_v46 }
  0x58   :  { %573 = vmatpush3.msra.mxu0 %v340_v31  ;;  %623 = vmatpush3.msra.mxu1 %v451_v54 }
  0x59   :  { %574 = vmatprep.subr.mxu0 %v355_v32  ;;  %624 = vmatprep.subr.mxu1 %v669_v46 }
  0x5a   :  { %575 = vmatpush3.msra.mxu0 %v339_v33  ;;  %625 = vmatpush3.msra.mxu1 %v450_v55 }
  0x5b   :  { %576 = vmatprep.subr.mxu0 %v354_v34  ;;  %626 = vmatprep.subr.mxu1 %v669_v46 }
  0x5c   :  { %577 = vmatpush3.msra.mxu0 %v338_v35  ;;  %627 = vmatpush3.msra.mxu1 %v449_v56 }
  0x5d   :  { %578 = vmatprep.subr.mxu0 %v353_v36  ;;  %628 = vmatprep.subr.mxu1 %v669_v46 }
  0x5e   :  { %579 = vmatpush3.msra.mxu0 %v337_v37  ;;  %629 = vmatpush3.msra.mxu1 %v448_v8 }
  0x5f   :  { %580 = vmatprep.subr.mxu0 %v352_v38  ;;  %630 = vmatprep.subr.mxu1 %v669_v46 }
  0x60   :  { %581 = vmatpush3.msra.mxu0 %v336_v39  ;;  %631 = vmatpush3.msra.mxu1 %v447_v41 }
  0x61   :  { %582 = vmatprep.subr.mxu0 %v351_v40  ;;  %632 = vmatprep.subr.mxu1 %v669_v46 }
  0x62   :  { %583 = vmatpush3.msra.mxu0 %v335_v42  ;;  %633 = vmatpush3.msra.mxu1 %v446_v9 }
  0x63   :  { %584 = vmatprep.subr.mxu0 %v350_v43  ;;  %634 = vmatprep.subr.mxu1 %v669_v46 }
  0x64   :  { %585 = vmatpush3.msra.mxu0 %v334_v44  ;;  %635 = vmatpush3.msra.mxu1 %v445_v10 }
  0x65   :  { %636 = vmatprep.subr.mxu1 %v669_v46 }
  0x66   :  { %637 = vmatpush3.msra.mxu1 %v444_v11 }
 0x104   :  { %v256_v62 = vpop.f32.mrf.mxu0  ;;  %v327_v63 = vpop.f32.mrf.mxu1 }
 0x105   :  { %v257_v0 = vadd.f32 %v256_v62, %v161_v60 }
 0x106   :  { %v258_v1 = vpop.f32.mrf.mxu0  ;;  %v329_v4 = vpop.f32.mrf.mxu1 }
 0x107   :  { %v259_v2 = vadd.f32 %v258_v1, %v165_v61  ;;  %v328_v3 = vadd.f32 %v327_v63, %v257_v0 }
 0x109   :  { %v330_v5 = vadd.f32 %v329_v4, %v259_v2  ;;  %v332_v7 = vmax.f32 %v328_v3, 0.0 }
 0x10b   :  { %v333_v6 = vmax.f32 %v330_v5, 0.0 }
 0x10d   :  { %437 = vmatprep.mubr.f32.mxu0 %v333_v6 }
 0x10e   :  { %438 = vmatmul.mubr.f32.vlgmr.msra.gmra.mxu0 %v332_v7 }
 0x1ce   :  { %v586_v12 = vpop.f32.mrf.mxu0 }
 0x1d0   :  { %v587_v14 = vpop.f32.mrf.mxu0 }
 0x1d1   :  { %v588_v15 = vadd.f32 %v587_v14, %v586_v12 }
 0x1d3   :  { %v440_v16 = vadd.f32 %v588_v15, %v552_v13 }
 0x1d5   :  { %v443_v17 = vmax.f32 %v440_v16, 0.0 }
 0x1d7   :  { %639 = vmatmul.mubr.f32.vlgmr.msra.gmra.mxu1 %v443_v17 }
 0x297   :  { %v533_v19 = vpop.f32.mrf.mxu1 }
 0x298   :  { %v534_v20 = vadd.f32 %v553_v18, %v533_v19 }
 0x299   :  { %v640_v21 = vpop.f32.mrf.mxu1 }
 0x29a   :  { %537 = vst [vmem:[#allocation2] sm:$0x3] %v534_v20 }
 0x29b   :  { %657 = shalt.err (!%p654_p4)
}
 0x29c   :  { %547 = dma.vmem_to_hbm [thread:$0]  %s545_s5, 32, %s1284_s7, [#allocation3]  }
 0x29d   :  { %666 = dma.done.wait [#allocation3], 32  }
 0x29e   :  { %667 = vsyncadd [#allocation3], 4294967264 }
 0x29f   :  { %551 = vsyncpa [#allocation3], 1 }

// kernel: ridbnet_forward.2
= control target key start
LH: loop header
LB: loop body
LE: loop exit
PB: predicated region body
PF: predicated region fallthrough
CT: control target
= control target key end

     0   :  { %12 = vsyncpa [#allocation3], 0  ;;  %s2579_s0 = inlined_call_operand.vmem [shape: bf16[2,128,8], index: 0, kind: input, shape index: {}]   ;;  %s2580_s1 = inlined_call_operand.vmem [shape: bf16[8,128], index: 1, kind: input, shape index: {}]   ;;  %s2581_s2 = inlined_call_operand.vmem [shape: f32[1,128], index: 2, kind: input, shape index: {}]   ;;  %s2582_s3 = inlined_call_operand.vmem [shape: bf16[128,512], index: 3, kind: input, shape index: {}]   ;;  %s2583_s4 = inlined_call_operand.vmem [shape: f32[1,512], index: 4, kind: input, shape index: {}]   ;;  %s2584_s5 = inlined_call_operand.hbm [shape: f32[2,512,128], index: 5, kind: output, shape index: {0}]   ;;  %s2585_s6 = inlined_call_operand.vmem [shape: f32[2,1,512], index: 6, kind: output, shape index: {1}]  }
   0x1   :  { %14 = vsyncpa [#allocation3 + $0x1], 0  ;;  %s1783_s21 = smov 0   ;;  %s1785_s22 = smov 0  }
   0x2   :  { %s1787_s23 = smov 0   ;;  %s1789_s24 = smov 0  }
   0x3   :  { %s1791_s25 = smov 0   ;;  %s1793_s26 = smov 0  }
   0x4 LB: > { %s1455_s27 = sadd.s32 4294967295, %s1740_s26   ;;  %s1456_s28 = sadd.s32 4294967294, %s1740_s26   ;;  %s1740_s26 = sphi %s1793_s26, %s20_s26   ;;  %s1736_s25 = sphi %s1791_s25, %s2638_s25   ;;  %s1732_s24 = sphi %s1789_s24, %s2637_s24   ;;  %s1728_s23 = sphi %s1787_s23, %s2636_s23   ;;  %s1724_s22 = sphi %s1785_s22, %s2635_s22   ;;  %s1720_s21 = sphi %s1783_s21, %s2634_s21  }
   0x5   : > { %s32_s29 = sadd.s32 1, %s1736_s25  ;;  %s153_s30 = sadd.s32 1, %s1728_s23 }
   0x6   : > { %p34_p0 = scmp.ge.s32.totalorder %s32_s29, 2  ;;  %p163_p1 = scmp.ne.s32.totalorder %s1728_s23, %s1724_s22 }
   0x7   : > { %p164_p2 = scmp.eq.s32.totalorder %s1455_s27, 1  ;;  %p169_p3 = scmp.ne.s32.totalorder %s1724_s22, %s1720_s21 }
   0x8   : > { %s2640_s29 = smov (%p34_p0, %s32_s29), 0  ;;  %p170_p5 = scmp.eq.s32.totalorder %s1456_s28, 1 }
   0x9   : > { %p1823_p4 = por %p164_p2, %p163_p1  ;;  %s148_s8 = ssub.s32 %s1736_s25, %s2640_s29 }
   0xa   : > { %p1459_p6 = scmp.ge.s32.totalorder %s1740_s26, 1  ;;  %p151_p7 = scmp.eq.s32.totalorder %s148_s8, 0 }
   0xb   : > { %p1830_p8 = por %p170_p5, %p169_p3  ;;  %p239_p9 = scmp.lt.s32.totalorder %s1740_s26, 3 }
   0xc   : > { %s1836_s10 = scalar_select %p151_p7, %s1728_s23, %s153_s30  }
   0xd   : > { %p240_p10 = pnand %p1459_p6, %p239_p9 }
   0xe   : > { %p278_p11 = scmp.lt.s32.totalorder (!%p240_p10), %s1732_s24, 1  ;;  %s268_s13 = sand.u32 (!%p240_p10), 1, %s1724_s22  }
   0xf   : > { %243 = sbr.rel (%p240_p10) target bundleno = 693 (0x2b5), region = 40  ;;  %s1460_s14 = sshll.u32 (!%p240_p10), %s268_s13, 9 }
  0x10   : > { %s2455_s16 = scalar_lea.vmem (!%p240_p10), [#allocation2], %s1460_s14  ;;  %s1745_s28 = smov (!%p240_p10), [#allocation2]  }
  0x11   : > { %s1350_s17 = sshll.u32 (!%p240_p10), %s2455_s16, 4  ;;  %s1668_s30 = sshll.u32 (!%p240_p10), %s1745_s28, 4  ;;  %s2528_s17 = int_to_ptr.vmem [resolvable:$true] %s1350_s17  ;;  %s1669_s30 = int_to_ptr.vmem [resolvable:$false] %s1668_s30 }
  0x12   : > { %p1671_p1 = scmp.lt.s32.totalorder (!%p240_p10), %s2528_s17, %s1669_s30 }
  0x14   : > { %v317_v0 = vld [vmem:[%s2580_s1] sm:$0xf]  ;;  %vm390_vm0 = vcmask 1043456   ;;  %v1616_v2 = vld [vmem:[%s2582_s3 + $0xe4] ss:$16 sps:$4 sm:$0xff]   ;;  %s1846_s15 = scalar_select %p278_p11, %s1732_s24, 1 }
  0x15   : > { %1547 = vmatprep.subr.msk.bf16.mxu0 %vm390_vm0, %v317_v0  ;;  %v392_v1 = vsel %vm390_vm0, %v317_v0, 0  ;;  %v1620_v3 = vld [vmem:[%s2582_s3 + $0xec] ss:$16 sps:$4 sm:$0xff]   ;;  %729 = vmatprep.subr.bf16.mxu1 %v1616_v2  ;;  %v1621_v4 = vld [vmem:[%s2582_s3 + $0xe0] ss:$16 sps:$4 sm:$0xff]   ;;  %vm365_vm1 = vcmask 64512  }
  0x16   : > { %1530 = vmatpush3.bf16.msra.mxu0 %v392_v1  ;;  %s1518_s20 = sshll.u32 %s1846_s15, 6  ;;  %v1622_v5 = vld [vmem:[%s2582_s3 + $0xc4] ss:$16 sps:$4 sm:$0xff]   ;;  %v1618_v6 = vld [vmem:[%s2582_s3 + $0xe8] ss:$16 sps:$4 sm:$0xff]   ;;  %730 = vmatpush1.bf16.msra.mxu1 %v1621_v4  ;;  %v1742_v42 = vmov 0  }
  0x17   : > { %842 = vmatprep.subr.bf16.mxu0 %v1620_v3  ;;  %s1861_s11 = scalar_lea.vmem %s2579_s0, %s1518_s20  ;;  %v1626_v7 = vld [vmem:[%s2582_s3 + $0xcc] ss:$16 sps:$4 sm:$0xff]   ;;  %v1627_v8 = vld [vmem:[%s2582_s3 + $0xc0] ss:$16 sps:$4 sm:$0xff]   ;;  %731 = vmatprep.subr.bf16.mxu1 %v1622_v5  ;;  %v1624_v12 = vld [vmem:[%s2582_s3 + $0xc8] ss:$16 sps:$4 sm:$0xff]  }
  0x18   : > { %v1608_v9 = vld [vmem:[%s1861_s11] sm:$0xff]   ;;  %v1609_v10 = vld [vmem:[%s1861_s11 + $0x8] sm:$0xff]   ;;  %v1610_v11 = vld [vmem:[%s1861_s11 + $0x10] sm:$0xff]   ;;  %761 = vmatprep.mubr.bf16.mxu1 %v1742_v42  ;;  %s1463_s27 = sshll.u32 %s1846_s15, 2 }
  0x19   : > { %1531 = vmatprep.mubr.msk.bf16.mxu0 %vm365_vm1, %v1608_v9  ;;  %v1611_v13 = vld [vmem:[%s1861_s11 + $0x18] sm:$0xff]   ;;  %v1612_v14 = vld [vmem:[%s1861_s11 + $0x20] sm:$0xff]   ;;  %v1613_v22 = vld [vmem:[%s1861_s11 + $0x28] sm:$0xff]   ;;  %s2004_s8 = scalar_lea.vmem %s2585_s6, %s1463_s27  ;;  %s2534_s27 = scalar_lea.sflag [#allocation3], %s268_s13 }
  0x1a   : > { %1532 = vmatmul.mubr.msk.bf16.vlgmr.msra.gmra.mxu0 %vm365_vm1, %v1609_v10  ;;  %732 = vmatpush1.bf16.msra.mxu1 %v1627_v8  ;;  %v1628_v15 = vld [vmem:[%s2582_s3 + $0xa4] ss:$16 sps:$4 sm:$0xff]   ;;  %v1630_v16 = vld [vmem:[%s2582_s3 + $0xa8] ss:$16 sps:$4 sm:$0xff]   ;;  %v1632_v17 = vld [vmem:[%s2582_s3 + $0xac] ss:$16 sps:$4 sm:$0xff]  }
  0x1b   : > { %1535 = vmatprep.mubr.msk.bf16.mxu0 %vm365_vm1, %v1610_v11  ;;  %843 = vmatpush1.bf16.msra.mxu0 %v1618_v6  ;;  %v1633_v18 = vld [vmem:[%s2582_s3 + $0xa0] ss:$16 sps:$4 sm:$0xff]   ;;  %v1634_v19 = vld [vmem:[%s2582_s3 + $0x84] ss:$16 sps:$4 sm:$0xff]   ;;  %v1636_v20 = vld [vmem:[%s2582_s3 + $0x88] ss:$16 sps:$4 sm:$0xff]  }
  0x1c   : > { %844 = vmatprep.subr.bf16.mxu0 %v1626_v7  ;;  %733 = vmatprep.subr.bf16.mxu1 %v1628_v15  ;;  %v1638_v21 = vld [vmem:[%s2582_s3 + $0x8c] ss:$16 sps:$4 sm:$0xff]   ;;  %v1639_v23 = vld [vmem:[%s2582_s3 + $0x80] ss:$16 sps:$4 sm:$0xff]   ;;  %v1640_v25 = vld [vmem:[%s2582_s3 + $0x64] ss:$16 sps:$4 sm:$0xff]  }
  0x1d   : > { %v1614_v24 = vld [vmem:[%s1861_s11 + $0x30] sm:$0xff]   ;;  %v1642_v26 = vld [vmem:[%s2582_s3 + $0x68] ss:$16 sps:$4 sm:$0xff]   ;;  %v1644_v27 = vld [vmem:[%s2582_s3 + $0x6c] ss:$16 sps:$4 sm:$0xff]  }
  0x1e   : > { %734 = vmatpush1.bf16.msra.mxu1 %v1633_v18  ;;  %v1645_v28 = vld [vmem:[%s2582_s3 + $0x60] ss:$16 sps:$4 sm:$0xff]   ;;  %v1615_v29 = vld [vmem:[%s1861_s11 + $0x38] sm:$0xff]   ;;  %v1646_v30 = vld [vmem:[%s2582_s3 + $0x44] ss:$16 sps:$4 sm:$0xff]   ;;  %s1519_s11 = sshll.u32 %s1732_s24, 13 }
  0x1f   : > { %845 = vmatpush1.bf16.msra.mxu0 %v1624_v12  ;;  %735 = vmatprep.subr.bf16.mxu1 %v1634_v19  ;;  %v1650_v31 = vld [vmem:[%s2582_s3 + $0x4c] ss:$16 sps:$4 sm:$0xff]   ;;  %v1648_v32 = vld [vmem:[%s2582_s3 + $0x48] ss:$16 sps:$4 sm:$0xff]   ;;  %v1651_v33 = vld [vmem:[%s2582_s3 + $0x40] ss:$16 sps:$4 sm:$0xff]   ;;  %s2526_s20 = scalar_lea.hbm %s2584_s5, %s1519_s11 }
  0x20   : > { %846 = vmatprep.subr.bf16.mxu0 %v1632_v17  ;;  %v1652_v34 = vld [vmem:[%s2582_s3 + $0x24] ss:$16 sps:$4 sm:$0xff]   ;;  %v1656_v35 = vld [vmem:[%s2582_s3 + $0x2c] ss:$16 sps:$4 sm:$0xff]   ;;  %v1654_v36 = vld [vmem:[%s2582_s3 + $0x28] ss:$16 sps:$4 sm:$0xff]  }
  0x21   : > { %v1657_v37 = vld [vmem:[%s2582_s3 + $0x20] ss:$16 sps:$4 sm:$0xff]   ;;  %v1658_v38 = vld [vmem:[%s2582_s3 + $0x4] ss:$16 sps:$4 sm:$0xff]   ;;  %v1662_v39 = vld [vmem:[%s2582_s3 + $0xc] ss:$16 sps:$4 sm:$0xff]  }
  0x22   : > { %1536 = vmatmul.mubr.msk.bf16.gmra.mxu0 %vm365_vm1, %v1611_v13  ;;  %736 = vmatpush1.bf16.msra.mxu1 %v1639_v23  ;;  %v1660_v40 = vld [vmem:[%s2582_s3 + $0x8] ss:$16 sps:$4 sm:$0xff]   ;;  %v1663_v41 = vld [vmem:[%s2582_s3] ss:$16 sps:$4 sm:$0xff]   ;;  %s1664_s24 = scalar_lea.vmem %s2528_s17, 8192 }
  0x23   : > { %1539 = vmatprep.mubr.msk.bf16.mxu0 %vm365_vm1, %v1612_v14  ;;  %847 = vmatpush1.bf16.msra.mxu0 %v1630_v16  ;;  %v1968_v45 = vld [vmem:[%s2581_s2] ss:$0 sm:$0xff]  ;;  %p1665_p12 = scmp.ne.s32.totalorder %s2528_s17, %s1664_s24 }
  0x24   : > { %848 = vmatprep.subr.bf16.mxu0 %v1638_v21  ;;  %737 = vmatprep.subr.bf16.mxu1 %v1640_v25 }
  0x25   : > { %p1666_p13 = pnand %p1665_p12, %p1823_p4 }
  0x26   : > { %738 = vmatpush1.bf16.msra.mxu1 %v1645_v28 }
  0x27   : > { %849 = vmatpush1.bf16.msra.mxu0 %v1636_v20  ;;  %739 = vmatprep.subr.bf16.mxu1 %v1646_v30  ;;  %p1667_p0 = pneg %p1666_p13 }
  0x28   : > { %850 = vmatprep.subr.bf16.mxu0 %v1644_v27 }
  0x2a   : > { %1540 = vmatmul.mubr.msk.bf16.gmra.mxu0 %vm365_vm1, %v1613_v22  ;;  %740 = vmatpush1.bf16.msra.mxu1 %v1651_v33 }
  0x2b   : > { %1543 = vmatprep.mubr.msk.bf16.mxu0 %vm365_vm1, %v1614_v24  ;;  %851 = vmatpush1.bf16.msra.mxu0 %v1642_v26 }
  0x2c   : > { %852 = vmatprep.subr.bf16.mxu0 %v1650_v31  ;;  %741 = vmatprep.subr.bf16.mxu1 %v1652_v34 }
  0x2e   : > { %742 = vmatpush1.bf16.msra.mxu1 %v1657_v37 }
  0x2f   : > { %853 = vmatpush1.bf16.msra.mxu0 %v1648_v32  ;;  %743 = vmatprep.subr.bf16.mxu1 %v1658_v38  ;;  %v1743_v38 = vmov -inf  }
  0x30   : > { %854 = vmatprep.subr.bf16.mxu0 %v1656_v35 }
  0x32   : > { %1544 = vmatmul.mubr.msk.bf16.gmra.mxu0 %vm365_vm1, %v1615_v29  ;;  %744 = vmatpush1.bf16.msra.mxu1 %v1663_v41  ;;  %v547_v41 = vld [vmem:[%s2583_s4] sm:$0xf] }
  0x33   : > { %855 = vmatpush1.bf16.msra.mxu0 %v1654_v36  ;;  %874 = vmatprep.mubr.bf16.mxu0 %v1742_v42  ;;  %v296_v36 = vlaneseq }
  0x34   : > { %856 = vmatprep.subr.bf16.mxu0 %v1662_v39 }
  0x35   : > { %vm2006_vm2 = vcmp.lt.s32.totalorder %v296_v36, 512  ;;  %v2013_v39 = vshrl.u32 %v296_v36, 7 }
  0x36   : > { %300 = vst.msk [vmem:[%s2004_s8] sm:$0xf] %vm2006_vm2, %v1743_v38 }
  0x37   : > { %857 = vmatpush1.bf16.msra.mxu0 %v1660_v40  ;;  %v551_v40 = vsub.s32 0, %v2013_v39 }
  0xda   : > { %v1533_v43 = vpop.f32.mrf.mxu0 }
  0xdb   : > { %v437_v57 = vadd.f32 %v1533_v43, %v1968_v45  ;;  %v2020_v43 = vrot.slane %v547_v41, %v551_v40 }
  0xdc   : > { %v428_v44 = vpop.f32.mrf.mxu0 }
  0xdd   : > { %v429_v47 = vadd.f32 %v1968_v45, %v428_v44  ;;  %v493_v60 = vmax.f32 %v437_v57, 0.0 }
  0xde   : > { %v1534_v46 = vpop.f32.mrf.mxu0 }
  0xdf   : > { %v491_v51 = vmax.f32 %v429_v47, 0.0  ;;  %v440_v54 = vadd.f32 %v1534_v46, %v1968_v45 }
  0xe0   : > { %v431_v48 = vpop.f32.mrf.mxu0 }
  0xe1   : > { %v432_v49 = vadd.f32 %v1968_v45, %v431_v48  ;;  %v494_v58 = vmax.f32 %v440_v54, 0.0 }
  0xe2   : > { %v1537_v50 = vpop.f32.mrf.mxu0 }
  0xe3   : > { %v492_v52 = vmax.f32 %v432_v49, 0.0  ;;  %v508_v61 = vpack.c.bf16 %v494_v58, %v493_v60  ;;  %v453_v4 = vadd.f32 %v1537_v50, %v1968_v45 }
  0xe4   : > { %v444_v53 = vpop.f32.mrf.mxu0 }
  0xe5   : > { %v507_v55 = vpack.c.bf16 %v492_v52, %v491_v51  ;;  %v445_v62 = vadd.f32 %v1968_v45, %v444_v53  ;;  %v497_v8 = vmax.f32 %v453_v4, 0.0 }
  0xe6   : > { %v1538_v56 = vpop.f32.mrf.mxu0 }
  0xe7   : > { %762 = vmatmul.mubr.bf16.vlgmr.msra.gmra.mxu1 %v507_v55  ;;  %875 = vmatmul.mubr.bf16.vlgmr.msra.gmra.mxu0 %v507_v55  ;;  %v495_v1 = vmax.f32 %v445_v62, 0.0  ;;  %v456_v5 = vadd.f32 %v1538_v56, %v1968_v45 }
  0xe8   : > { %771 = vmatprep.mubr.bf16.mxu1 %v1742_v42  ;;  %884 = vmatprep.mubr.bf16.mxu0 %v1742_v42  ;;  %v447_v59 = vpop.f32.mrf.mxu0 }
  0xe9   : > { %v448_v63 = vadd.f32 %v1968_v45, %v447_v59  ;;  %v498_v9 = vmax.f32 %v456_v5, 0.0 }
  0xea   : > { %v1541_v0 = vpop.f32.mrf.mxu0 }
  0xeb   : > { %v496_v2 = vmax.f32 %v448_v63, 0.0  ;;  %v510_v11 = vpack.c.bf16 %v498_v9, %v497_v8  ;;  %v469_v18 = vadd.f32 %v1541_v0, %v1968_v45 }
  0xec   : > { %v460_v3 = vpop.f32.mrf.mxu0 }
  0xed   : > { %v509_v6 = vpack.c.bf16 %v496_v2, %v495_v1  ;;  %v461_v12 = vadd.f32 %v1968_v45, %v460_v3  ;;  %v501_v22 = vmax.f32 %v469_v18, 0.0 }
  0xee   : > { %v1542_v7 = vpop.f32.mrf.mxu0 }
  0xef   : > { %772 = vmatmul.mubr.bf16.gmra.mxu1 %v508_v61  ;;  %885 = vmatmul.mubr.bf16.gmra.mxu0 %v508_v61  ;;  %v499_v15 = vmax.f32 %v461_v12, 0.0  ;;  %v472_v19 = vadd.f32 %v1542_v7, %v1968_v45  ;;  %v563_v12 = vsub.s32 3, %v2013_v39 }
  0xf0   : > { %781 = vmatprep.mubr.bf16.mxu1 %v1742_v42  ;;  %894 = vmatprep.mubr.bf16.mxu0 %v1742_v42  ;;  %v463_v10 = vpop.f32.mrf.mxu0 }
  0xf1   : > { %v464_v13 = vadd.f32 %v1968_v45, %v463_v10  ;;  %v502_v23 = vmax.f32 %v472_v19, 0.0  ;;  %v559_v10 = vsub.s32 2, %v2013_v39 }
  0xf2   : > { %v1545_v14 = vpop.f32.mrf.mxu0 }
  0xf3   : > { %v500_v16 = vmax.f32 %v464_v13, 0.0  ;;  %v512_v25 = vpack.c.bf16 %v502_v23, %v501_v22  ;;  %v485_v30 = vadd.f32 %v1545_v14, %v1968_v45  ;;  %v2081_v23 = vrot.slane %v547_v41, %v563_v12 }
  0xf4   : > { %v476_v17 = vpop.f32.mrf.mxu0 }
  0xf5   : > { %v511_v20 = vpack.c.bf16 %v500_v16, %v499_v15  ;;  %v477_v26 = vadd.f32 %v1968_v45, %v476_v17  ;;  %v505_v33 = vmax.f32 %v485_v30, 0.0 }
  0xf6   : > { %v1546_v21 = vpop.f32.mrf.mxu0 }
  0xf7   : > { %782 = vmatmul.mubr.bf16.gmra.mxu1 %v509_v6  ;;  %895 = vmatmul.mubr.bf16.gmra.mxu0 %v509_v6  ;;  %v503_v28 = vmax.f32 %v477_v26, 0.0  ;;  %v488_v31 = vadd.f32 %v1546_v21, %v1968_v45 }
  0xf8   : > { %791 = vmatprep.mubr.bf16.mxu1 %v1742_v42  ;;  %904 = vmatprep.mubr.bf16.mxu0 %v1742_v42  ;;  %v479_v24 = vpop.f32.mrf.mxu0 }
  0xf9   : > { %v480_v27 = vadd.f32 %v1968_v45, %v479_v24  ;;  %v506_v34 = vmax.f32 %v488_v31, 0.0 }
  0xfb   : > { %v504_v29 = vmax.f32 %v480_v27, 0.0  ;;  %v514_v35 = vpack.c.bf16 %v506_v34, %v505_v33 }
  0xfd   : > { %v513_v32 = vpack.c.bf16 %v504_v29, %v503_v28 }
  0xff   : > { %792 = vmatmul.mubr.bf16.gmra.mxu1 %v510_v11  ;;  %905 = vmatmul.mubr.bf16.gmra.mxu0 %v510_v11 }
 0x100   : > { %801 = vmatprep.mubr.bf16.mxu1 %v1742_v42  ;;  %914 = vmatprep.mubr.bf16.mxu0 %v1742_v42 }
 0x107   : > { %802 = vmatmul.mubr.bf16.gmra.mxu1 %v511_v20  ;;  %915 = vmatmul.mubr.bf16.gmra.mxu0 %v511_v20  ;;  %v2075_v20 = vrot.slane %v547_v41, %v559_v10 }
 0x108   : > { %811 = vmatprep.mubr.bf16.mxu1 %v1742_v42  ;;  %924 = vmatprep.mubr.bf16.mxu0 %v1742_v42 }
 0x10f   : > { %812 = vmatmul.mubr.bf16.gmra.mxu1 %v512_v25  ;;  %925 = vmatmul.mubr.bf16.gmra.mxu0 %v512_v25 }
 0x110   : > { %821 = vmatprep.mubr.bf16.mxu1 %v1742_v42  ;;  %934 = vmatprep.mubr.bf16.mxu0 %v1742_v42 }
 0x117   : > { %822 = vmatmul.mubr.bf16.gmra.mxu1 %v513_v32  ;;  %935 = vmatmul.mubr.bf16.gmra.mxu0 %v513_v32 }
 0x118   : > { %831 = vmatprep.mubr.bf16.mxu1 %v1742_v42  ;;  %944 = vmatprep.mubr.bf16.mxu0 %v1742_v42  ;;  %v555_v42 = vsub.s32 1, %v2013_v39 }
 0x11a   : > { %v2022_v44 = vrot.slane %v547_v41, %v555_v42 }
 0x11f   : > { %832 = vmatmul.mubr.bf16.gmra.mxu1 %v514_v35  ;;  %945 = vmatmul.mubr.bf16.gmra.mxu0 %v514_v35 }
 0x1a7   : > { %v763_v45 = vpop.f32.mrf.mxu1  ;;  %v876_v46 = vpop.f32.mrf.mxu0 }
 0x1a8   : > { %v2025_v47 = vadd.f32 %v763_v45, %v2020_v43  ;;  %v2098_v32 = vadd.f32 %v876_v46, %v2075_v20 }
 0x1a9   : > { %v765_v48 = vpop.f32.mrf.mxu1  ;;  %v878_v49 = vpop.f32.mrf.mxu0 }
 0x1aa   : > { %v955_v50 = vmax.f32 %v2025_v47, 0.0  ;;  %v2029_v51 = vadd.f32 %v765_v48, %v2022_v44  ;;  %v2104_v34 = vadd.f32 %v878_v49, %v2081_v23 }
 0x1ab   : > { %v767_v52 = vpop.f32.mrf.mxu1  ;;  %v880_v53 = vpop.f32.mrf.mxu0 }
 0x1ac   : > { %v956_v54 = vmax.f32 %v2029_v51, 0.0  ;;  %v2033_v55 = vadd.f32 %v767_v52, %v2020_v43  ;;  %1019 = vxpose.xlu0.b32.start [1/16] %v955_v50, 128  ;;  %v2086_v26 = vadd.f32 %v880_v53, %v2075_v20 }
 0x1ad   : > { %v769_v56 = vpop.f32.mrf.mxu1  ;;  %v882_v57 = vpop.f32.mrf.mxu0 }
 0x1ae   : > { %v959_v58 = vmax.f32 %v2033_v55, 0.0  ;;  %v2039_v59 = vadd.f32 %v769_v56, %v2022_v44  ;;  %1051 = vxpose.xlu1.b32.start [1/16] %v956_v54, 128  ;;  %v2090_v28 = vadd.f32 %v882_v57, %v2081_v23  ;;  %v961_v41 = vmax.f32 %v2086_v26, 0.0 }
 0x1af   : > { %v773_v60 = vpop.f32.mrf.mxu1  ;;  %v886_v61 = vpop.f32.mrf.mxu0  ;;  %v957_v56 = vmax.f32 %v2098_v32, 0.0 }
 0x1b0   : > { %v960_v62 = vmax.f32 %v2039_v59, 0.0  ;;  %1020 = vxpose.xlu0.b32.cont [2/16] %v959_v58, 128  ;;  %v2047_v63 = vadd.f32 %v773_v60, %v2020_v43  ;;  %v2107_v35 = vadd.f32 %v886_v61, %v2075_v20  ;;  %v2607_v48 = vmax.f32 %v2090_v28, 0.0 }
 0x1b1   : > { %v775_v0 = vpop.f32.mrf.mxu1  ;;  %v888_v1 = vpop.f32.mrf.mxu0  ;;  %v958_v61 = vmax.f32 %v2104_v34, 0.0 }
 0x1b2   : > { %v2050_v2 = vadd.f32 %v775_v0, %v2022_v44  ;;  %1052 = vxpose.xlu1.b32.cont [2/16] %v960_v62, 128  ;;  %v963_v3 = vmax.f32 %v2047_v63, 0.0  ;;  %v2114_v42 = vadd.f32 %v888_v1, %v2081_v23  ;;  %v1212_v0 = vmax.f32 %v955_v50, %v959_v58 }
 0x1b3   : > { %v777_v4 = vpop.f32.mrf.mxu1  ;;  %v890_v5 = vpop.f32.mrf.mxu0  ;;  %v2586_v1 = vmax.f32 %v2107_v35, 0.0  ;;  %v1233_v47 = vmax.f32 %v956_v54, %v960_v62  ;;  %v1275_v58 = vmax.f32 %v958_v61, %v2607_v48  ;;  %v2613_v34 = vmax.f32 %v2107_v35, 0.0 }
 0x1b4   : > { %v964_v6 = vmax.f32 %v2050_v2, 0.0  ;;  %v2057_v7 = vadd.f32 %v777_v4, %v2020_v43  ;;  %1021 = vxpose.xlu0.b32.cont [3/16] %v963_v3, 128  ;;  %v2122_v49 = vadd.f32 %v890_v5, %v2075_v20  ;;  %v2602_v50 = vmax.f32 %v2114_v42, 0.0 }
 0x1b5   : > { %v779_v8 = vpop.f32.mrf.mxu1  ;;  %v892_v9 = vpop.f32.mrf.mxu0 }
 0x1b6   : > { %v967_v11 = vmax.f32 %v2057_v7, 0.0  ;;  %1053 = vxpose.xlu1.b32.cont [3/16] %v964_v6, 128  ;;  %v2067_v13 = vadd.f32 %v779_v8, %v2022_v44  ;;  %v2128_v57 = vadd.f32 %v892_v9, %v2081_v23  ;;  %v1254_v9 = vmax.f32 %v957_v56, %v961_v41 }
 0x1b7   : > { %v783_v14 = vpop.f32.mrf.mxu1  ;;  %v896_v15 = vpop.f32.mrf.mxu0  ;;  %v2588_v10 = vmax.f32 %v2122_v49, 0.0 }
 0x1b8   : > { %v2070_v16 = vadd.f32 %v783_v14, %v2020_v43  ;;  %v968_v17 = vmax.f32 %v2067_v13, 0.0  ;;  %1022 = vxpose.xlu0.b32.cont [4/16] %v967_v11, 128  ;;  %v2160_v12 = vadd.f32 %v896_v15, %v2075_v20  ;;  %v2587_v62 = vmax.f32 %v2128_v57, 0.0 }
 0x1b9   : > { %v785_v18 = vpop.f32.mrf.mxu1  ;;  %v898_v19 = vpop.f32.mrf.mxu0  ;;  %v1213_v15 = vmax.f32 %v1212_v0, %v963_v3  ;;  %v2616_v35 = vmax.f32 %v2128_v57, 0.0 }
 0x1ba   : > { %v971_v21 = vmax.f32 %v2070_v16, 0.0  ;;  %v2079_v22 = vadd.f32 %v785_v18, %v2022_v44  ;;  %1054 = vxpose.xlu1.b32.cont [4/16] %v968_v17, 128  ;;  %v2167_v14 = vadd.f32 %v898_v19, %v2081_v23 }
 0x1bb   : > { %v787_v24 = vpop.f32.mrf.mxu1  ;;  %v900_v25 = vpop.f32.mrf.mxu0 }
 0x1bc   : > { %v972_v27 = vmax.f32 %v2079_v22, 0.0  ;;  %v2093_v29 = vadd.f32 %v787_v24, %v2020_v43  ;;  %1023 = vxpose.xlu0.b32.cont [5/16] %v971_v21, 128 }
 0x1bd   : > { %v789_v30 = vpop.f32.mrf.mxu1  ;;  %v902_v31 = vpop.f32.mrf.mxu0 }
 0x1be   : > { %v2101_v33 = vadd.f32 %v789_v30, %v2022_v44  ;;  %v975_v36 = vmax.f32 %v2093_v29, 0.0  ;;  %1055 = vxpose.xlu1.b32.cont [5/16] %v972_v27, 128  ;;  %v1255_v30 = vmax.f32 %v1254_v9, %v2586_v1  ;;  %v2187_v63 = vadd.f32 %v902_v31, %v2081_v23 }
 0x1bf   : > { %v793_v38 = vpop.f32.mrf.mxu1  ;;  %v906_v40 = vpop.f32.mrf.mxu0  ;;  %v2601_v9 = vmax.f32 %v2160_v12, 0.0 }
 0x1c0   : > { %v976_v45 = vmax.f32 %v2101_v33, 0.0  ;;  %v2118_v46 = vadd.f32 %v793_v38, %v2020_v43  ;;  %1024 = vxpose.xlu0.b32.cont [6/16] %v975_v36, 128  ;;  %v2178_v38 = vadd.f32 %v900_v25, %v2075_v20  ;;  %v1214_v25 = vmax.f32 %v1213_v15, %v967_v11 }
 0x1c1   : > { %v795_v52 = vpop.f32.mrf.mxu1  ;;  %v908_v53 = vpop.f32.mrf.mxu0  ;;  %v1256_v0 = vmax.f32 %v1255_v30, %v2588_v10  ;;  %v2591_v11 = vmax.f32 %v2167_v14, 0.0  ;;  %v2212_v30 = vadd.f32 %v906_v40, %v2075_v20 }
 0x1c2   : > { %v979_v60 = vmax.f32 %v2118_v46, 0.0  ;;  %v2138_v4 = vadd.f32 %v795_v52, %v2022_v44  ;;  %1056 = vxpose.xlu1.b32.cont [6/16] %v976_v45, 128  ;;  %v2590_v15 = vmax.f32 %v2178_v38, 0.0 }
 0x1c3   : > { %v797_v5 = vpop.f32.mrf.mxu1  ;;  %v910_v8 = vpop.f32.mrf.mxu0  ;;  %v1257_v40 = vmax.f32 %v1256_v0, %v2601_v9  ;;  %v2621_v57 = vmax.f32 %v2212_v30, 0.0 }
 0x1c4   : > { %v2152_v55 = vadd.f32 %v797_v5, %v2020_v43  ;;  %v980_v59 = vmax.f32 %v2138_v4, 0.0  ;;  %1025 = vxpose.xlu0.b32.cont [7/16] %v979_v60, 128  ;;  %v1234_v5 = vmax.f32 %v1233_v47, %v964_v6 }
 0x1c5   : > { %v799_v51 = vpop.f32.mrf.mxu1  ;;  %v912_v54 = vpop.f32.mrf.mxu0  ;;  %v1258_v22 = vmax.f32 %v1257_v40, %v2590_v15 }
 0x1c6   : > { %v983_v18 = vmax.f32 %v2152_v55, 0.0  ;;  %v2171_v24 = vadd.f32 %v799_v51, %v2022_v44  ;;  %1057 = vxpose.xlu1.b32.cont [7/16] %v980_v59, 128  ;;  %v1276_v51 = vmax.f32 %v1275_v58, %v2602_v50  ;;  %v1235_v31 = vmax.f32 %v1234_v5, %v968_v17 }
 0x1c7   : > { %v803_v52 = vpop.f32.mrf.mxu1  ;;  %v916_v19 = vpop.f32.mrf.mxu0  ;;  %v1215_v58 = vmax.f32 %v1214_v25, %v971_v21  ;;  %v2589_v5 = vmax.f32 %v2187_v63, 0.0  ;;  %v2230_v25 = vadd.f32 %v910_v8, %v2075_v20  ;;  %v2592_v8 = vmax.f32 %v2212_v30, 0.0 }
 0x1c8   : > { %v984_v3 = vmax.f32 %v2171_v24, 0.0  ;;  %v2196_v1 = vadd.f32 %v803_v52, %v2020_v43  ;;  %1026 = vxpose.xlu0.b32.cont [8/16] %v983_v18, 128  ;;  %v1277_v7 = vmax.f32 %v1276_v51, %v2587_v62  ;;  %v2219_v51 = vadd.f32 %v908_v53, %v2081_v23 }
 0x1c9   : > { %v805_v2 = vpop.f32.mrf.mxu1  ;;  %v918_v6 = vpop.f32.mrf.mxu0  ;;  %v1216_v10 = vmax.f32 %v1215_v58, %v975_v36  ;;  %v2254_v58 = vadd.f32 %v916_v19, %v2075_v20 }
 0x1ca   : > { %v2206_v47 = vadd.f32 %v805_v2, %v2022_v44  ;;  %v987_v52 = vmax.f32 %v2196_v1, 0.0  ;;  %1058 = vxpose.xlu1.b32.cont [8/16] %v984_v3, 128  ;;  %v1236_v1 = vmax.f32 %v1235_v31, %v972_v27  ;;  %v1278_v53 = vmax.f32 %v1277_v7, %v2591_v11 }
 0x1cb   : > { %v807_v13 = vpop.f32.mrf.mxu1  ;;  %v920_v17 = vpop.f32.mrf.mxu0  ;;  %v2594_v7 = vmax.f32 %v2219_v51, 0.0  ;;  %v2263_v40 = vadd.f32 %v918_v6, %v2081_v23  ;;  %v2625_v37 = vmax.f32 %v2254_v58, 0.0 }
 0x1cc   : > { %v988_v16 = vmax.f32 %v2206_v47, 0.0  ;;  %v2223_v21 = vadd.f32 %v807_v13, %v2020_v43  ;;  %1027 = vxpose.xlu0.b32.cont [9/16] %v987_v52, 128  ;;  %v2237_v13 = vadd.f32 %v912_v54, %v2081_v23  ;;  %v1237_v27 = vmax.f32 %v1236_v1, %v976_v45 }
 0x1cd   : > { %v809_v2 = vpop.f32.mrf.mxu1  ;;  %v922_v62 = vpop.f32.mrf.mxu0  ;;  %v1279_v54 = vmax.f32 %v1278_v53, %v2589_v5  ;;  %v1217_v45 = vmax.f32 %v1216_v10, %v979_v60  ;;  %v2268_v19 = vadd.f32 %v920_v17, %v2075_v20  ;;  %v1259_v60 = vmax.f32 %v1258_v22, %v2592_v8 }
 0x1ce   : > { %v991_v0 = vmax.f32 %v2223_v21, 0.0  ;;  %v2246_v31 = vadd.f32 %v809_v2, %v2022_v44  ;;  %1059 = vxpose.xlu1.b32.cont [9/16] %v988_v16, 128  ;;  %v2593_v21 = vmax.f32 %v2230_v25, 0.0  ;;  %v2595_v5 = vmax.f32 %v2237_v13, 0.0 }
 0x1cf   : > { %v813_v29 = vpop.f32.mrf.mxu1  ;;  %v926_v36 = vpop.f32.mrf.mxu0  ;;  %v1238_v10 = vmax.f32 %v1237_v27, %v980_v59  ;;  %v2277_v6 = vadd.f32 %v922_v62, %v2081_v23  ;;  %v1280_v17 = vmax.f32 %v1279_v54, %v2594_v7  ;;  %v2596_v4 = vmax.f32 %v2263_v40, 0.0 }
 0x1d0   : > { %v2257_v33 = vadd.f32 %v813_v29, %v2020_v43  ;;  %v992_v1 = vmax.f32 %v2246_v31, 0.0  ;;  %1028 = vxpose.xlu0.b32.cont [10/16] %v991_v0, 128  ;;  %v1260_v22 = vmax.f32 %v1259_v60, %v2593_v21  ;;  %v2288_v59 = vadd.f32 %v926_v36, %v2075_v20 }
 0x1d1   : > { %v815_v2 = vpop.f32.mrf.mxu1  ;;  %v928_v53 = vpop.f32.mrf.mxu0  ;;  %v1239_v55 = vmax.f32 %v1238_v10, %v984_v3  ;;  %v2598_v54 = vmax.f32 %v2268_v19, 0.0  ;;  %v2597_v60 = vmax.f32 %v2277_v6, 0.0  ;;  %v2627_v30 = vmax.f32 %v2268_v19, 0.0 }
 0x1d2   : > { %v995_v29 = vmax.f32 %v2257_v33, 0.0  ;;  %v816_v46 = vadd.f32 %v815_v2, %v2022_v44  ;;  %1060 = vxpose.xlu1.b32.cont [10/16] %v992_v1, 128  ;;  %v1218_v33 = vmax.f32 %v1217_v45, %v983_v18  ;;  %v2599_v2 = vmax.f32 %v2254_v58, 0.0 }
 0x1d3   : > { %v817_v31 = vpop.f32.mrf.mxu1  ;;  %v930_v15 = vpop.f32.mrf.mxu0  ;;  %v1281_v18 = vmax.f32 %v1280_v17, %v2595_v5  ;;  %v2299_v36 = vadd.f32 %v928_v53, %v2081_v23 }
 0x1d4   : > { %v996_v11 = vmax.f32 %v816_v46, 0.0  ;;  %v818_v62 = vadd.f32 %v817_v31, %v2020_v43  ;;  %1029 = vxpose.xlu0.b32.cont [11/16] %v995_v29, 128  ;;  %v1219_v46 = vmax.f32 %v1218_v33, %v987_v52  ;;  %v1261_v24 = vmax.f32 %v1260_v22, %v2599_v2 }
 0x1d5   : > { %v819_v27 = vpop.f32.mrf.mxu1  ;;  %v932_v8 = vpop.f32.mrf.mxu0  ;;  %v2304_v3 = vadd.f32 %v930_v15, %v2075_v20  ;;  %v1240_v52 = vmax.f32 %v1239_v55, %v988_v16  ;;  %v1282_v53 = vmax.f32 %v1281_v18, %v2596_v4 }
 0x1d6   : > { %v820_v45 = vadd.f32 %v819_v27, %v2022_v44  ;;  %v999_v31 = vmax.f32 %v818_v62, 0.0  ;;  %1061 = vxpose.xlu1.b32.cont [11/16] %v996_v11, 128  ;;  %v1220_v33 = vmax.f32 %v1219_v46, %v991_v0  ;;  %v2600_v62 = vmax.f32 %v2288_v59, 0.0 }
 0x1d7   : > { %v823_v21 = vpop.f32.mrf.mxu1  ;;  %v936_v7 = vpop.f32.mrf.mxu0  ;;  %v1262_v22 = vmax.f32 %v1261_v24, %v2598_v54  ;;  %v2315_v15 = vadd.f32 %v932_v8, %v2081_v23  ;;  %v1241_v47 = vmax.f32 %v1240_v52, %v992_v1  ;;  %v1283_v16 = vmax.f32 %v1282_v53, %v2597_v60 }
 0x1d8   : > { %v1000_v10 = vmax.f32 %v820_v45, 0.0  ;;  %v824_v17 = vadd.f32 %v823_v21, %v2020_v43  ;;  %1030 = vxpose.xlu0.b32.cont [12/16] %v999_v31, 128  ;;  %v2318_v21 = vadd.f32 %v936_v7, %v2075_v20  ;;  %v2606_v0 = vmax.f32 %v2299_v36, 0.0 }
 0x1d9   : > { %v825_v27 = vpop.f32.mrf.mxu1  ;;  %v938_v5 = vpop.f32.mrf.mxu0  ;;  %v1221_v4 = vmax.f32 %v1220_v33, %v995_v29  ;;  %v2603_v24 = vmax.f32 %v2304_v3, 0.0  ;;  %v1263_v7 = vmax.f32 %v1262_v22, %v2600_v62  ;;  %v1242_v1 = vmax.f32 %v1241_v47, %v996_v11 }
 0x1da   : > { %v1003_v45 = vmax.f32 %v824_v17, 0.0  ;;  %v826_v55 = vadd.f32 %v825_v27, %v2022_v44  ;;  %1062 = vxpose.xlu1.b32.cont [12/16] %v1000_v10, 128  ;;  %v2332_v53 = vadd.f32 %v938_v5, %v2081_v23  ;;  %v2604_v29 = vmax.f32 %v2315_v15, 0.0 }
 0x1db   : > { %v827_v18 = vpop.f32.mrf.mxu1  ;;  %v940_v46 = vpop.f32.mrf.mxu0  ;;  %v2605_v33 = vmax.f32 %v2318_v21, 0.0  ;;  %v1222_v2 = vmax.f32 %v1221_v4, %v999_v31  ;;  %v1264_v47 = vmax.f32 %v1263_v7, %v2603_v24  ;;  %v2632_v58 = vmax.f32 %v2315_v15, 0.0 }
 0x1dc   : > { %v828_v8 = vadd.f32 %v827_v18, %v2020_v43  ;;  %v2327_v17 = vadd.f32 %v940_v46, %v2075_v20  ;;  %v1004_v52 = vmax.f32 %v826_v55, 0.0  ;;  %1031 = vxpose.xlu0.b32.cont [13/16] %v1003_v45, 128  ;;  %v1284_v46 = vmax.f32 %v1283_v16, %v2606_v0 }
 0x1dd   : > { %v829_v27 = vpop.f32.mrf.mxu1  ;;  %v942_v60 = vpop.f32.mrf.mxu0  ;;  %v1243_v55 = vmax.f32 %v1242_v1, %v1000_v10  ;;  %v1265_v10 = vmax.f32 %v1264_v47, %v2605_v33 }
 0x1de   : > { %v1007_v54 = vmax.f32 %v828_v8, 0.0  ;;  %v830_v18 = vadd.f32 %v829_v27, %v2022_v44  ;;  %v2340_v11 = vadd.f32 %v942_v60, %v2081_v23  ;;  %1063 = vxpose.xlu1.b32.cont [13/16] %v1004_v52, 128  ;;  %v1009_v62 = vmax.f32 %v2327_v17, 0.0 }
 0x1df   : > { %v833_v5 = vpop.f32.mrf.mxu1  ;;  %v946_v22 = vpop.f32.mrf.mxu0  ;;  %v1223_v8 = vmax.f32 %v1222_v2, %v1003_v45  ;;  %v1006_v27 = vmax.f32 %v2332_v53, 0.0  ;;  %v1285_v16 = vmax.f32 %v1284_v46, %v2604_v29 }
 0x1e0   : > { %v1008_v9 = vmax.f32 %v830_v18, 0.0  ;;  %v834_v50 = vadd.f32 %v833_v5, %v2020_v43  ;;  %v2348_v4 = vadd.f32 %v946_v22, %v2075_v20  ;;  %1032 = vxpose.xlu0.b32.cont [14/16] %v1007_v54, 128  ;;  %v1010_v1 = vmax.f32 %v2340_v11, 0.0 }
 0x1e1   : > { %v835_v60 = vpop.f32.mrf.mxu1  ;;  %v948_v31 = vpop.f32.mrf.mxu0  ;;  %v1224_v45 = vmax.f32 %v1223_v8, %v1007_v54  ;;  %v1266_v46 = vmax.f32 %v1265_v10, %v1009_v62  ;;  %v1286_v54 = vmax.f32 %v1285_v16, %v1006_v27 }
 0x1e2   : > { %v836_v7 = vadd.f32 %v835_v60, %v2022_v44  ;;  %v2356_v2 = vadd.f32 %v948_v31, %v2081_v23  ;;  %v1011_v18 = vmax.f32 %v834_v50, 0.0  ;;  %v1013_v5 = vmax.f32 %v2348_v4, 0.0  ;;  %1064 = vxpose.xlu1.b32.cont [14/16] %v1008_v9, 128 }
 0x1e3   : > { %v837_v22 = vpop.f32.mrf.mxu1  ;;  %v950_v24 = vpop.f32.mrf.mxu0  ;;  %v1244_v31 = vmax.f32 %v1243_v55, %v1004_v52 }
 0x1e4   : > { %v1012_v29 = vmax.f32 %v836_v7, 0.0  ;;  %v838_v47 = vadd.f32 %v837_v22, %v2020_v43  ;;  %v2364_v60 = vadd.f32 %v950_v24, %v2075_v20  ;;  %v1014_v50 = vmax.f32 %v2356_v2, 0.0  ;;  %1033 = vxpose.xlu0.b32.cont [15/16] %v1011_v18, 128 }
 0x1e5   : > { %v839_v8 = vpop.f32.mrf.mxu1  ;;  %v952_v33 = vpop.f32.mrf.mxu0  ;;  %v1225_v0 = vmax.f32 %v1224_v45, %v1011_v18  ;;  %v1267_v48 = vmax.f32 %v1266_v46, %v1013_v5  ;;  %v1245_v43 = vmax.f32 %v1244_v31, %v1008_v9  ;;  %v1287_v20 = vmax.f32 %v1286_v54, %v1010_v1 }
 0x1e6   : > { %v1015_v10 = vmax.f32 %v838_v47, 0.0  ;;  %v1017_v7 = vmax.f32 %v2364_v60, 0.0  ;;  %v840_v24 = vadd.f32 %v839_v8, %v2022_v44  ;;  %v2376_v52 = vadd.f32 %v952_v33, %v2081_v23  ;;  %1065 = vxpose.xlu1.b32.cont [15/16] %v1012_v29, 128 }
 0x1e7   : > { %v1246_v45 = vmax.f32 %v1245_v43, %v1012_v29  ;;  %v1288_v18 = vmax.f32 %v1287_v20, %v1014_v50  ;;  %v1744_v8 = vmov 1966171168  }
 0x1e8   : > { %v1226_v55 = vmax.f32 %v1225_v0, %v1015_v10  ;;  %v1268_v16 = vmax.f32 %v1267_v48, %v1017_v7  ;;  %v1016_v22 = vmax.f32 %v840_v24, 0.0  ;;  %v1018_v9 = vmax.f32 %v2376_v52, 0.0  ;;  %1034 = vxpose.xlu0.b32.end [16/16] %v1015_v10, 128 }
 0x1e9   : > { %v1303_v43 = vunpack.c.l.s4 %v1744_v8 }
 0x1ea   : > { %v1227_v46 = vrot.slane %v1226_v55, 4  ;;  %v1269_v47 = vrot.slane %v1268_v16, 4  ;;  %v1247_v31 = vmax.f32 %v1246_v45, %v1016_v22  ;;  %v1289_v44 = vmax.f32 %v1288_v18, %v1018_v9  ;;  %1066 = vxpose.xlu1.b32.end [16/16] %v1016_v22, 128 }
 0x1ec   : > { %v1228_v23 = vmax.f32 %v1226_v55, %v1227_v46  ;;  %v1270_v0 = vmax.f32 %v1268_v16, %v1269_v47  ;;  %v1248_v33 = vrot.slane %v1247_v31, 4  ;;  %v1290_v54 = vrot.slane %v1289_v44, 4  ;;  %1083 = vxpose.xlu0.b32.start [1/16] %v957_v56, 128 }
 0x1ed   : > { %v1304_v55 = vunpack.c.0.s8 %v1303_v43  ;;  %v2612_v47 = vmax.f32 %v2090_v28, 0.0  ;;  %v2615_v28 = vmax.f32 %v2122_v49, 0.0  ;;  %v2620_v49 = vmax.f32 %v2187_v63, 0.0 }
 0x1ee   : > { %v1229_v48 = vrot.slane %v1228_v23, 2  ;;  %v1271_v29 = vrot.slane %v1270_v0, 2  ;;  %v1249_v20 = vmax.f32 %v1247_v31, %v1248_v33  ;;  %v1291_v10 = vmax.f32 %v1289_v44, %v1290_v54  ;;  %1115 = vxpose.xlu1.b32.start [1/16] %v958_v61, 128 }
 0x1ef   : > { %v1307_v61 = vsub.s32 %v1304_v55, %v2013_v39  ;;  %v2614_v33 = vmax.f32 %v2114_v42, 0.0  ;;  %v2617_v39 = vmax.f32 %v2160_v12, 0.0  ;;  %v2622_v12 = vmax.f32 %v2219_v51, 0.0 }
 0x1f0   : > { %v1230_v24 = vmax.f32 %v1228_v23, %v1229_v48  ;;  %v1272_v45 = vmax.f32 %v1270_v0, %v1271_v29  ;;  %v1250_v18 = vrot.slane %v1249_v20, 2  ;;  %v1292_v22 = vrot.slane %v1291_v10, 2  ;;  %1084 = vxpose.xlu0.b32.cont [2/16] %v961_v41, 128 }
 0x1f1   : > { %v2626_v63 = vmax.f32 %v2263_v40, 0.0  ;;  %v2629_v51 = vmax.f32 %v2288_v59, 0.0  ;;  %v2633_v40 = vmax.f32 %v2318_v21, 0.0 }
 0x1f2   : > { %v1231_v16 = vrot.slane %v1230_v24, 1  ;;  %v1273_v32 = vrot.slane %v1272_v45, 1  ;;  %v1251_v56 = vmax.f32 %v1249_v20, %v1250_v18  ;;  %v1293_v46 = vmax.f32 %v1291_v10, %v1292_v22  ;;  %1116 = vxpose.xlu1.b32.cont [2/16] %v2612_v47, 128  ;;  %v1211_v20 = vld [vmem:[%s2004_s8] sm:$0xf] }
 0x1f3   : > { %v2628_v18 = vmax.f32 %v2277_v6, 0.0 }
 0x1f4   : > { %v1252_v31 = vrot.slane %v1251_v56, 1  ;;  %v1294_v44 = vrot.slane %v1293_v46, 1  ;;  %1085 = vxpose.xlu0.b32.cont [3/16] %v2613_v34, 128  ;;  %v1232_v23 = vmax.f32 %v1230_v24, %v1231_v16  ;;  %v1274_v0 = vmax.f32 %v1272_v45, %v1273_v32 }
 0x1f5   : > { %v2618_v24 = vmax.f32 %v2167_v14, 0.0  ;;  %v2619_v45 = vmax.f32 %v2178_v38, 0.0  ;;  %v2623_v14 = vmax.f32 %v2230_v25, 0.0  ;;  %v2624_v38 = vmax.f32 %v2237_v13, 0.0 }
 0x1f6   : > { %v1253_v26 = vmax.f32 %v1251_v56, %v1252_v31  ;;  %v1295_v41 = vmax.f32 %v1293_v46, %v1294_v44  ;;  %1117 = vxpose.xlu1.b32.cont [3/16] %v2614_v33, 128  ;;  %v2630_v25 = vmax.f32 %v2299_v36, 0.0  ;;  %v2631_v13 = vmax.f32 %v2304_v3, 0.0 }
 0x1f8   : > { %v1300_v54 = vcombine.low %v1232_v23, %v1253_v26  ;;  %v1301_v48 = vcombine.low %v1274_v0, %v1295_v41  ;;  %1086 = vxpose.xlu0.b32.cont [4/16] %v2615_v28, 128 }
 0x1fa   : > { %v1308_v29 = vrot.slane %v1300_v54, %v1307_v61  ;;  %v1315_v8 = vrot.slane %v1301_v48, %v1307_v61  ;;  %1118 = vxpose.xlu1.b32.cont [4/16] %v2616_v35, 128 }
 0x1fc   : > { %v1316_v43 = vcombine.low %v1308_v29, %v1315_v8  ;;  %1087 = vxpose.xlu0.b32.cont [5/16] %v2617_v39, 128 }
 0x1fe   : > { %v1323_v10 = vrot.slane %v1316_v43, %v1307_v61  ;;  %1119 = vxpose.xlu1.b32.cont [5/16] %v2618_v24, 128 }
 0x200   : > { %v1325_v42 = vmax.f32 %v1211_v20, %v1323_v10  ;;  %1088 = vxpose.xlu0.b32.cont [6/16] %v2619_v45, 128 }
 0x202   : > { %1330 = vst.msk [vmem:[%s2004_s8] sm:$0xf] %vm2006_vm2, %v1325_v42  ;;  %1120 = vxpose.xlu1.b32.cont [6/16] %v2620_v49, 128  ;;  %s1670_s8 = scalar_lea.vmem %s1669_s30, 16384 }
 0x203   : > { %p1672_p2 = scmp.lt.s32.totalorder %s1670_s8, %s1664_s24 }
 0x204   : > { %1089 = vxpose.xlu0.b32.cont [7/16] %v2621_v57, 128 }
 0x205   : > { %p1673_p3 = por %p1672_p2, %p1671_p1 }
 0x206   : > { %1121 = vxpose.xlu1.b32.cont [7/16] %v2622_v12, 128 }
 0x207   : > { %p1674_p5 = pnand %p1673_p3, %p1667_p0 }
 0x208   : > { %1090 = vxpose.xlu0.b32.cont [8/16] %v2623_v14, 128 }
 0x20a   : > { %1122 = vxpose.xlu1.b32.cont [8/16] %v2624_v38, 128 }
 0x20c   : > { %1091 = vxpose.xlu0.b32.cont [9/16] %v2625_v37, 128 }
 0x20e   : > { %1123 = vxpose.xlu1.b32.cont [9/16] %v2626_v63, 128 }
 0x210   : > { %1092 = vxpose.xlu0.b32.cont [10/16] %v2627_v30, 128 }
 0x212   : > { %1124 = vxpose.xlu1.b32.cont [10/16] %v2628_v18, 128 }
 0x214   : > { %1093 = vxpose.xlu0.b32.cont [11/16] %v2629_v51, 128 }
 0x216   : > { %1125 = vxpose.xlu1.b32.cont [11/16] %v2630_v25, 128 }
 0x218   : > { %1094 = vxpose.xlu0.b32.cont [12/16] %v2631_v13, 128 }
 0x21a   : > { %1126 = vxpose.xlu1.b32.cont [12/16] %v2632_v58, 128 }
 0x21c   : > { %1095 = vxpose.xlu0.b32.cont [13/16] %v2633_v40, 128 }
 0x21e   : > { %1127 = vxpose.xlu1.b32.cont [13/16] %v1006_v27, 128 }
 0x220   : > { %1096 = vxpose.xlu0.b32.cont [14/16] %v1009_v62, 128 }
 0x222   : > { %1128 = vxpose.xlu1.b32.cont [14/16] %v1010_v1, 128 }
 0x224   : > { %1097 = vxpose.xlu0.b32.cont [15/16] %v1013_v5, 128 }
 0x226   : > { %1129 = vxpose.xlu1.b32.cont [15/16] %v1014_v50, 128 }
 0x228   : > { %1098 = vxpose.xlu0.b32.end [16/16] %v1017_v7, 128  ;;  %v1035_v19 = vpop.trf.xlu0 }
 0x229   : > { %1147 = vst [vmem:[%s2455_s16] sm:$0xff] %v1035_v19 }
 0x22a   : > { %1130 = vxpose.xlu1.b32.end [16/16] %v1018_v9, 128  ;;  %v1067_v6 = vpop.trf.xlu1 }
 0x22b   : > { %1163 = vst [vmem:[%s2455_s16 + $0x80] sm:$0xff] %v1067_v6 }
 0x22c   : > { %v1036_v59 = vpop.trf.xlu0 }
 0x22d   : > { %1148 = vst [vmem:[%s2455_s16 + $0x8] sm:$0xff] %v1036_v59 }
 0x22e   : > { %v1068_v36 = vpop.trf.xlu1 }
 0x22f   : > { %1164 = vst [vmem:[%s2455_s16 + $0x88] sm:$0xff] %v1068_v36 }
 0x230   : > { %v1037_v3 = vpop.trf.xlu0 }
 0x231   : > { %1149 = vst [vmem:[%s2455_s16 + $0x10] sm:$0xff] %v1037_v3 }
 0x232   : > { %v1069_v62 = vpop.trf.xlu1 }
 0x233   : > { %1165 = vst [vmem:[%s2455_s16 + $0x90] sm:$0xff] %v1069_v62 }
 0x234   : > { %v1038_v15 = vpop.trf.xlu0 }
 0x235   : > { %1150 = vst [vmem:[%s2455_s16 + $0x18] sm:$0xff] %v1038_v15 }
 0x236   : > { %v1070_v21 = vpop.trf.xlu1 }
 0x237   : > { %1166 = vst [vmem:[%s2455_s16 + $0x98] sm:$0xff] %v1070_v21 }
 0x238   : > { %v1039_v17 = vpop.trf.xlu0 }
 0x239   : > { %1151 = vst [vmem:[%s2455_s16 + $0x20] sm:$0xff] %v1039_v17 }
 0x23a   : > { %v1071_v53 = vpop.trf.xlu1 }
 0x23b   : > { %1167 = vst [vmem:[%s2455_s16 + $0xa0] sm:$0xff] %v1071_v53 }
 0x23c   : > { %v1040_v11 = vpop.trf.xlu0 }
 0x23d   : > { %1152 = vst [vmem:[%s2455_s16 + $0x28] sm:$0xff] %v1040_v11 }
 0x23e   : > { %v1072_v27 = vpop.trf.xlu1 }
 0x23f   : > { %1168 = vst [vmem:[%s2455_s16 + $0xa8] sm:$0xff] %v1072_v27 }
 0x240   : > { %v1041_v4 = vpop.trf.xlu0 }
 0x241   : > { %1153 = vst [vmem:[%s2455_s16 + $0x30] sm:$0xff] %v1041_v4 }
 0x242   : > { %v1073_v2 = vpop.trf.xlu1 }
 0x243   : > { %1169 = vst [vmem:[%s2455_s16 + $0xb0] sm:$0xff] %v1073_v2 }
 0x244   : > { %v1042_v1 = vpop.trf.xlu0 }
 0x245   : > { %1154 = vst [vmem:[%s2455_s16 + $0x38] sm:$0xff] %v1042_v1 }
 0x246   : > { %v1074_v5 = vpop.trf.xlu1 }
 0x247   : > { %1170 = vst [vmem:[%s2455_s16 + $0xb8] sm:$0xff] %v1074_v5 }
 0x248   : > { %v1043_v60 = vpop.trf.xlu0 }
 0x249   : > { %1155 = vst [vmem:[%s2455_s16 + $0x40] sm:$0xff] %v1043_v60 }
 0x24a   : > { %v1075_v50 = vpop.trf.xlu1 }
 0x24b   : > { %1171 = vst [vmem:[%s2455_s16 + $0xc0] sm:$0xff] %v1075_v50 }
 0x24c   : > { %v1044_v7 = vpop.trf.xlu0 }
 0x24d   : > { %1156 = vst [vmem:[%s2455_s16 + $0x48] sm:$0xff] %v1044_v7 }
 0x24e   : > { %v1076_v52 = vpop.trf.xlu1 }
 0x24f   : > { %1172 = vst [vmem:[%s2455_s16 + $0xc8] sm:$0xff] %v1076_v52 }
 0x250   : > { %v1045_v9 = vpop.trf.xlu0 }
 0x251   : > { %1157 = vst [vmem:[%s2455_s16 + $0x50] sm:$0xff] %v1045_v9 }
 0x252   : > { %v1077_v22 = vpop.trf.xlu1 }
 0x253   : > { %1173 = vst [vmem:[%s2455_s16 + $0xd0] sm:$0xff] %v1077_v22 }
 0x254   : > { %v1046_v55 = vpop.trf.xlu0 }
 0x255   : > { %1158 = vst [vmem:[%s2455_s16 + $0x58] sm:$0xff] %v1046_v55 }
 0x256   : > { %v1078_v16 = vpop.trf.xlu1 }
 0x257   : > { %1174 = vst [vmem:[%s2455_s16 + $0xd8] sm:$0xff] %v1078_v16 }
 0x258   : > { %v1047_v32 = vpop.trf.xlu0 }
 0x259   : > { %1159 = vst [vmem:[%s2455_s16 + $0x60] sm:$0xff] %v1047_v32 }
 0x25a   : > { %v1079_v56 = vpop.trf.xlu1 }
 0x25b   : > { %1175 = vst [vmem:[%s2455_s16 + $0xe0] sm:$0xff] %v1079_v56 }
 0x25c   : > { %v1048_v46 = vpop.trf.xlu0 }
 0x25d   : > { %1160 = vst [vmem:[%s2455_s16 + $0x68] sm:$0xff] %v1048_v46 }
 0x25e   : > { %v1080_v47 = vpop.trf.xlu1 }
 0x25f   : > { %1176 = vst [vmem:[%s2455_s16 + $0xe8] sm:$0xff] %v1080_v47 }
 0x260   : > { %v1049_v31 = vpop.trf.xlu0 }
 0x261   : > { %1161 = vst [vmem:[%s2455_s16 + $0x70] sm:$0xff] %v1049_v31 }
 0x262   : > { %v1081_v44 = vpop.trf.xlu1 }
 0x263   : > { %1177 = vst [vmem:[%s2455_s16 + $0xf0] sm:$0xff] %v1081_v44 }
 0x264   : > { %v1050_v34 = vpop.trf.xlu0 }
 0x265   : > { %1162 = vst [vmem:[%s2455_s16 + $0x78] sm:$0xff] %v1050_v34 }
 0x266   : > { %v1082_v61 = vpop.trf.xlu1 }
 0x267   : > { %1178 = vst [vmem:[%s2455_s16 + $0xf8] sm:$0xff] %v1082_v61 }
 0x268   : > { %v1099_v23 = vpop.trf.xlu0 }
 0x269   : > { %1179 = vst [vmem:[%s2455_s16 + $0x100] sm:$0xff] %v1099_v23 }
 0x26a   : > { %v1131_v0 = vpop.trf.xlu1 }
 0x26b   : > { %1195 = vst [vmem:[%s2455_s16 + $0x180] sm:$0xff] %v1131_v0 }
 0x26c   : > { %v1100_v26 = vpop.trf.xlu0 }
 0x26d   : > { %1180 = vst [vmem:[%s2455_s16 + $0x108] sm:$0xff] %v1100_v26 }
 0x26e   : > { %v1132_v41 = vpop.trf.xlu1 }
 0x26f   : > { %1196 = vst [vmem:[%s2455_s16 + $0x188] sm:$0xff] %v1132_v41 }
 0x270   : > { %v1101_v33 = vpop.trf.xlu0 }
 0x271   : > { %1181 = vst [vmem:[%s2455_s16 + $0x110] sm:$0xff] %v1101_v33 }
 0x272   : > { %v1133_v54 = vpop.trf.xlu1 }
 0x273   : > { %1197 = vst [vmem:[%s2455_s16 + $0x190] sm:$0xff] %v1133_v54 }
 0x274   : > { %v1102_v48 = vpop.trf.xlu0 }
 0x275   : > { %1182 = vst [vmem:[%s2455_s16 + $0x118] sm:$0xff] %v1102_v48 }
 0x276   : > { %v1134_v28 = vpop.trf.xlu1 }
 0x277   : > { %1198 = vst [vmem:[%s2455_s16 + $0x198] sm:$0xff] %v1134_v28 }
 0x278   : > { %v1103_v29 = vpop.trf.xlu0 }
 0x279   : > { %1183 = vst [vmem:[%s2455_s16 + $0x120] sm:$0xff] %v1103_v29 }
 0x27a   : > { %v1135_v8 = vpop.trf.xlu1 }
 0x27b   : > { %1199 = vst [vmem:[%s2455_s16 + $0x1a0] sm:$0xff] %v1135_v8 }
 0x27c   : > { %v1104_v35 = vpop.trf.xlu0 }
 0x27d   : > { %1184 = vst [vmem:[%s2455_s16 + $0x128] sm:$0xff] %v1104_v35 }
 0x27e   : > { %v1136_v43 = vpop.trf.xlu1 }
 0x27f   : > { %1200 = vst [vmem:[%s2455_s16 + $0x1a8] sm:$0xff] %v1136_v43 }
 0x280   : > { %v1105_v39 = vpop.trf.xlu0 }
 0x281   : > { %1185 = vst [vmem:[%s2455_s16 + $0x130] sm:$0xff] %v1105_v39 }
 0x282   : > { %v1137_v20 = vpop.trf.xlu1 }
 0x283   : > { %1201 = vst [vmem:[%s2455_s16 + $0x1b0] sm:$0xff] %v1137_v20 }
 0x284   : > { %v1106_v10 = vpop.trf.xlu0 }
 0x285   : > { %1186 = vst [vmem:[%s2455_s16 + $0x138] sm:$0xff] %v1106_v10 }
 0x286   : > { %v1138_v24 = vpop.trf.xlu1 }
 0x287   : > { %1202 = vst [vmem:[%s2455_s16 + $0x1b8] sm:$0xff] %v1138_v24 }
 0x288   : > { %v1107_v42 = vpop.trf.xlu0 }
 0x289   : > { %1187 = vst [vmem:[%s2455_s16 + $0x140] sm:$0xff] %v1107_v42 }
 0x28a   : > { %v1139_v45 = vpop.trf.xlu1 }
 0x28b   : > { %1203 = vst [vmem:[%s2455_s16 + $0x1c0] sm:$0xff] %v1139_v45 }
 0x28c   : > { %v1108_v49 = vpop.trf.xlu0 }
 0x28d   : > { %1188 = vst [vmem:[%s2455_s16 + $0x148] sm:$0xff] %v1108_v49 }
 0x28e   : > { %v1140_v57 = vpop.trf.xlu1 }
 0x28f   : > { %1204 = vst [vmem:[%s2455_s16 + $0x1c8] sm:$0xff] %v1140_v57 }
 0x290   : > { %v1109_v12 = vpop.trf.xlu0 }
 0x291   : > { %1189 = vst [vmem:[%s2455_s16 + $0x150] sm:$0xff] %v1109_v12 }
 0x292   : > { %v1141_v14 = vpop.trf.xlu1 }
 0x293   : > { %1205 = vst [vmem:[%s2455_s16 + $0x1d0] sm:$0xff] %v1141_v14 }
 0x294   : > { %v1110_v38 = vpop.trf.xlu0 }
 0x295   : > { %1190 = vst [vmem:[%s2455_s16 + $0x158] sm:$0xff] %v1110_v38 }
 0x296   : > { %v1142_v37 = vpop.trf.xlu1 }
 0x297   : > { %1206 = vst [vmem:[%s2455_s16 + $0x1d8] sm:$0xff] %v1142_v37 }
 0x298   : > { %v1111_v63 = vpop.trf.xlu0 }
 0x299   : > { %1191 = vst [vmem:[%s2455_s16 + $0x160] sm:$0xff] %v1111_v63 }
 0x29a   : > { %v1143_v30 = vpop.trf.xlu1 }
 0x29b   : > { %1207 = vst [vmem:[%s2455_s16 + $0x1e0] sm:$0xff] %v1143_v30 }
 0x29c   : > { %v1112_v18 = vpop.trf.xlu0 }
 0x29d   : > { %1192 = vst [vmem:[%s2455_s16 + $0x168] sm:$0xff] %v1112_v18 }
 0x29e   : > { %v1144_v51 = vpop.trf.xlu1 }
 0x29f   : > { %1208 = vst [vmem:[%s2455_s16 + $0x1e8] sm:$0xff] %v1144_v51 }
 0x2a0   : > { %v1113_v25 = vpop.trf.xlu0 }
 0x2a1   : > { %1193 = vst [vmem:[%s2455_s16 + $0x170] sm:$0xff] %v1113_v25 }
 0x2a2   : > { %v1145_v13 = vpop.trf.xlu1 }
 0x2a3   : > { %1209 = vst [vmem:[%s2455_s16 + $0x1f0] sm:$0xff] %v1145_v13 }
 0x2a4   : > { %v1114_v58 = vpop.trf.xlu0 }
 0x2a5   : > { %1194 = vst [vmem:[%s2455_s16 + $0x178] sm:$0xff] %v1114_v58 }
 0x2a6   : > { %v1146_v40 = vpop.trf.xlu1 }
 0x2a7   : > { %1210 = vst [vmem:[%s2455_s16 + $0x1f8] sm:$0xff] %v1146_v40 }
 0x2a8   : > { %1677 = shalt.err (!%p1674_p5)
}
 0x2a9   : > { %s1678_s12 = scalar_lea.hbm %s2526_s20, 8192  ;;  %s1682_s14 = scalar_lea.hbm %s2584_s5, 16384 }
 0x2aa   : > { %p1679_p6 = scmp.ne.s32.totalorder %s2526_s20, %s1678_s12  ;;  %p1683_p10 = scmp.lt.s32.totalorder %s2526_s20, %s2584_s5 }
 0x2ab   : > { %p1684_p11 = scmp.lt.s32.totalorder %s1682_s14, %s1678_s12 }
 0x2ac   : > { %p1680_p7 = pnand %p1679_p6, %p1823_p4 }
 0x2ad   : > { %p1685_p12 = por %p1684_p11, %p1683_p10 }
 0x2ae   : > { %p1681_p9 = pneg %p1680_p7 }
 0x2b0   : > { %p1686_p13 = pnand %p1685_p12, %p1681_p9 }
 0x2b2   : > { %1689 = shalt.err (!%p1686_p13)
}
 0x2b3   : > { %s1746_s18 = smov 128   ;;  %s1747_s19 = smov 8  }
 0x2b4   : > { %1548 = dma.vmem_to_hbm [thread:$0]  (%p1823_p4), %s2528_s17, 8192, %s2526_s20, %s2534_s27, %s1746_s18, %s1746_s18, %s1747_s19  }
 0x2b5 PF: > { %p1554_p0 = scmp.ge.s32.totalorder %s1740_s26, 2  ;;  %s1368_s24 = sand.u32 1, %s1720_s21  }
 0x2b6   : > { %s1369_s28 = scalar_lea.sflag [#allocation3], %s1368_s24 }
 0x2b7   : > { %p1551_p1 = pnand %p1554_p0, %p1830_p8 }
 0x2b9   : > { %p1552_p2 = pneg %p1551_p1 }
 0x2bb   : > { %1715 = dma.done.wait (%p1552_p2), %s1369_s28, 8192  }
 0x2bc   : > { %1717 = vsyncadd (%p1552_p2), %s1369_s28, 4294959104  ;;  %s20_s26 = sadd.s32 1, %s1740_s26   ;;  %s2634_s21 = smov %s1724_s22 }
 0x2bd   : > { %p17_p3 = scmp.ge.s32.totalorder %s20_s26, 4   ;;  %s2635_s22 = smov %s1728_s23 }
 0x2be   : > { %s2636_s23 = smov %s1836_s10  ;;  %s2637_s24 = smov %s1736_s25 }
 0x2bf   : > { %s2638_s25 = smov %s2640_s29  ;;  %19 = sbr.rel (!%p17_p3) target bundleno = 4 (0x4), region = 91 }
 0x2c4   :  { %1381 = vsyncpa [#allocation3], 1 }
 0x2c5   :  { %1383 = vsyncpa [#allocation3 + $0x1], 1 }

</bundles_post_ra>
